<compile_context>
chip_gen: v6e
topology: v6e:2x2x1
jax: 0.10.0
libtpu: 0.0.40
codegen_flags: <defaults>
</compile_context>

<pallas_src>
import jax
import jax.numpy as jnp
from jax.experimental import pallas as pl
from jax.experimental.pallas import tpu as pltpu


def _make_kernel(num_heads: int, head_dim: int, tq: int, nk: int, nv: int,
                 embed_dim: int):
    H, D, TQ, Nk, Nv, C = num_heads, head_dim, tq, nk, nv, embed_dim

    def kernel(q_ref, k_ref, v_ref, wq_ref, wk_ref, wv_ref, wo_ref, bo_ref,
               out_ref):
        # Per-(batch, query-tile) refs: q_ref (TQ, C), k_ref (Nk, C), v_ref (Nv, C).
        cdt = q_ref.dtype

        # Full-width projections: MXU packed in depth (C) and output width (C).
        # The attention scale is pre-folded into wq in the wrapper.
        # preferred_element_type=cdt keeps bf16 outputs for bf16 activations
        # (the MXU still accumulates in f32 internally) -> no cast passes, half
        # the intermediate VMEM.
        Q = jnp.dot(q_ref[...], wq_ref[...], preferred_element_type=cdt)  # (TQ, C)
        K = jnp.dot(k_ref[...], wk_ref[...], preferred_element_type=cdt)  # (Nk, C)
        V = jnp.dot(v_ref[...], wv_ref[...], preferred_element_type=cdt)  # (Nv, C)

        # Split heads after the projection (XLU relayout; hides under the
        # attention matmuls).  Channel ordering matches PyTorch's
        # reshape(B, N, H, D) head split: channel = h*D + d.
        Qh = Q.reshape(TQ, H, D).transpose(1, 0, 2)   # (H, TQ, D)
        Kh = K.reshape(Nk, H, D).transpose(1, 0, 2)   # (H, Nk, D)
        Vh = V.reshape(Nv, H, D).transpose(1, 0, 2)   # (H, Nv, D)

        # Head-batched attention scores; softmax math stays in f32.
        s = jnp.einsum("hqd,hkd->hqk", Qh, Kh,
                       preferred_element_type=jnp.float32)        # (H, TQ, Nk)
        m = jnp.max(s, axis=-1, keepdims=True)
        p = jnp.exp(s - m)                                        # unnormalized
        denom = jnp.sum(p, axis=-1, keepdims=True)                # (H, TQ, 1)

        # PV matmul on the unnormalized probabilities, then normalize the much
        # smaller (H, TQ, D) tensor (~Nk/D fewer VPU multiplies); exact
        # reciprocal since it is now tiny.
        ctx = jnp.einsum("hqk,hkd->hqd", p.astype(cdt), Vh,
                         preferred_element_type=jnp.float32)      # (H, TQ, D)
        ctx = ctx * pl.reciprocal(denom, approx=False)

        # Merge heads back into lanes and apply a single full-width output
        # projection: (TQ, C) @ (C, C), f32 accumulation, then bias.
        ctx_m = ctx.astype(cdt).transpose(1, 0, 2).reshape(TQ, C)
        out = jnp.dot(ctx_m, wo_ref[...], preferred_element_type=jnp.float32)
        out_ref[...] = (out + bo_ref[...]).astype(out_ref.dtype)

    return kernel


def cross_attention_pallas(query_tokens, key_tokens, value_tokens,
                           wq, wk, wv, wo, bo, num_heads):
    """query/key/value_tokens: (B, N, C). Weights PyTorch-style (out, in), bo (C,)."""
    B, Nq, C = query_tokens.shape
    Nk = key_tokens.shape[1]
    Nv = value_tokens.shape[1]
    assert Nk == Nv, "attention requires num_key_patches == num_value_patches"
    H = num_heads
    assert C % H == 0, "embed_dim must be divisible by num_heads"
    D = C // H
    scale = D ** (-0.5)
    cdt = query_tokens.dtype

    # Nq tiling: bounds per-step VMEM (scores (H,TQ,Nk) etc.) at production
    # shapes and gives a second parallel grid axis for v7x's two TensorCores.
    TQ = Nq
    for t in (256, 128):
        if Nq % t == 0:
            TQ = t
            break

    # Wrapper-side weight prep (free, XLA side):
    #   * transpose to (in, out) so the kernel computes x @ W (lane-dense (C, C)),
    #   * fold the attention scale into Wq,
    #   * cast weights to the activation dtype (bf16 operands feed the MXU
    #     directly; accumulation stays f32 via preferred_element_type).
    wq_t = (wq.T * scale).astype(cdt)                 # (C, C)
    wk_t = wk.T.astype(cdt)                           # (C, C)
    wv_t = wv.T.astype(cdt)                           # (C, C)
    wo_t = wo.T.astype(cdt)                           # (C, C)
    bo_2d = bo.reshape(1, C).astype(jnp.float32)      # (1, C)

    kernel = _make_kernel(H, D, TQ, Nk, Nv, C)

    grid_spec = pltpu.PrefetchScalarGridSpec(
        num_scalar_prefetch=0,
        grid=(B, Nq // TQ),
        in_specs=[
            pl.BlockSpec((None, TQ, C), lambda b, qi: (b, qi, 0)),  # query tile
            pl.BlockSpec((None, Nk, C), lambda b, qi: (b, 0, 0)),   # keys (resident over qi)
            pl.BlockSpec((None, Nv, C), lambda b, qi: (b, 0, 0)),   # values (resident over qi)
            pl.BlockSpec((C, C), lambda b, qi: (0, 0)),             # Wq^T (scaled)
            pl.BlockSpec((C, C), lambda b, qi: (0, 0)),             # Wk^T
            pl.BlockSpec((C, C), lambda b, qi: (0, 0)),             # Wv^T
            pl.BlockSpec((C, C), lambda b, qi: (0, 0)),             # Wo^T
            pl.BlockSpec((1, C), lambda b, qi: (0, 0)),             # bo
        ],
        out_specs=pl.BlockSpec((None, TQ, C), lambda b, qi: (b, qi, 0)),
    )

    out = pl.pallas_call(
        kernel,
        out_shape=jax.ShapeDtypeStruct((B, Nq, C), cdt),
        grid_spec=grid_spec,
        compiler_params=pltpu.CompilerParams(
            # (batch, Nq-tile) both parallel: feeds both v7x TensorCores even
            # for B==1; no-op on single-TC v5e/v6e.
            dimension_semantics=("parallel", "parallel"),
            # Raise scoped VMEM above the 16 MiB (v5e) / 32 MiB (v6e/v7x)
            # defaults; stays within v7x's 64 MiB physical cap.
            vmem_limit_bytes=64 * 1024 * 1024,
        ),
    )(query_tokens, key_tokens, value_tokens, wq_t, wk_t, wv_t, wo_t, bo_2d)
    return out


def cross_attention_ref(query_tokens, key_tokens, value_tokens,
                        wq, wk, wv, wo, bo, num_heads):
    """Plain-JAX reference mirroring the PyTorch forward (eval mode, rope=None)."""
    B, Nq, C = query_tokens.shape
    Nk = key_tokens.shape[1]
    D = C // num_heads
    scale = D ** (-0.5)

    def proj(x, w):
        return jnp.einsum("bnc,oc->bno", x, w)

    q = proj(query_tokens, wq).reshape(B, Nq, num_heads, D).transpose(0, 2, 1, 3)
    k = proj(key_tokens, wk).reshape(B, Nk, num_heads, D).transpose(0, 2, 1, 3)
    v = proj(value_tokens, wv).reshape(B, Nk, num_heads, D).transpose(0, 2, 1, 3)

    scores = jnp.einsum("bhqd,bhkd->bhqk", q, k) * scale
    probs = jax.nn.softmax(scores, axis=-1)
    att = jnp.einsum("bhqk,bhkd->bhqd", probs, v)
    att = att.transpose(0, 2, 1, 3).reshape(B, Nq, C)
    return jnp.einsum("bnc,oc->bno", att, wo) + bo


if __name__ == "__main__":
    # Small shapes consistent with the module; head_dim = 128 keeps the
    # in-kernel head split lane-aligned.
    B = 2          # batch
    Nq = 16        # num query patches
    Nk = 24        # num key/value patches (cross-attention: != Nq)
    C = 256        # embed_dim
    H = 2          # num_heads  (head_dim = 128)

    key = jax.random.PRNGKey(0)
    ks = jax.random.split(key, 8)
    query_tokens = jax.random.normal(ks[0], (B, Nq, C), jnp.float32)
    key_tokens = jax.random.normal(ks[1], (B, Nk, C), jnp.float32)
    value_tokens = jax.random.normal(ks[2], (B, Nk, C), jnp.float32)

    # Deterministic parameter init (PyTorch nn.Linear weight layout: (out, in)).
    w_scale = 1.0 / (C ** 0.5)
    wq = jax.random.uniform(ks[3], (C, C), jnp.float32, -w_scale, w_scale)
    wk = jax.random.uniform(ks[4], (C, C), jnp.float32, -w_scale, w_scale)
    wv = jax.random.uniform(ks[5], (C, C), jnp.float32, -w_scale, w_scale)
    wo = jax.random.uniform(ks[6], (C, C), jnp.float32, -w_scale, w_scale)
    bo = jax.random.uniform(ks[7], (C,), jnp.float32, -w_scale, w_scale)

    ref = cross_attention_ref(query_tokens, key_tokens, value_tokens,
                              wq, wk, wv, wo, bo, num_heads=H)

    # f32 activation path (exact softmax reciprocal -> tight tolerance).
    out_f32 = cross_attention_pallas(query_tokens, key_tokens, value_tokens,
                                     wq, wk, wv, wo, bo, num_heads=H)
    out_f32 = jax.block_until_ready(out_f32)
    assert out_f32.shape == (B, Nq, C)
    err32 = jnp.max(jnp.abs(out_f32 - ref))
    assert jnp.allclose(out_f32, ref, atol=2e-3, rtol=2e-3), \
        f"f32 max abs err = {err32}"

    # bf16 activation path: MXU consumes bf16 operands with f32 accumulation.
    out_bf16 = cross_attention_pallas(
        query_tokens.astype(jnp.bfloat16), key_tokens.astype(jnp.bfloat16),
        value_tokens.astype(jnp.bfloat16), wq, wk, wv, wo, bo, num_heads=H)
    out_bf16 = jax.block_until_ready(out_bf16).astype(jnp.float32)
    err16 = jnp.max(jnp.abs(out_bf16 - ref))
    assert jnp.allclose(out_bf16, ref, atol=5e-2, rtol=5e-2), \
        f"bf16 max abs err = {err16}"

    print("KERNEL_OK")
</pallas_src>

<mosaic_0001>
module attributes {stable_mosaic.version = 11 : i64} {
  func.func @kernel(%arg0: i32, %arg1: i32, %arg2: memref<1x16x256xf32, #tpu.memory_space<vmem>>, %arg3: memref<1x24x256xf32, #tpu.memory_space<vmem>>, %arg4: memref<1x24x256xf32, #tpu.memory_space<vmem>>, %arg5: memref<256x256xf32, #tpu.memory_space<vmem>>, %arg6: memref<256x256xf32, #tpu.memory_space<vmem>>, %arg7: memref<256x256xf32, #tpu.memory_space<vmem>>, %arg8: memref<256x256xf32, #tpu.memory_space<vmem>>, %arg9: memref<1x256xf32, #tpu.memory_space<vmem>>, %arg10: memref<1x16x256xf32, #tpu.memory_space<vmem>>) attributes {dimension_semantics = [#tpu.dimension_semantics<parallel>, #tpu.dimension_semantics<parallel>], iteration_bounds = array<i64: 2, 1>, scalar_prefetch = 0 : i64, scratch_operands = 0 : i64, tpu.core_type = #tpu.core_type<tc>, window_params = [{transform_indices = @transform_0, window_bounds = array<i64: 1, 16, 256>}, {transform_indices = @transform_1, window_bounds = array<i64: 1, 24, 256>}, {transform_indices = @transform_2, window_bounds = array<i64: 1, 24, 256>}, {pipeline_mode = #tpu.pipeline_mode<synchronous>, transform_indices = @transform_3, window_bounds = array<i64: 256, 256>}, {pipeline_mode = #tpu.pipeline_mode<synchronous>, transform_indices = @transform_4, window_bounds = array<i64: 256, 256>}, {pipeline_mode = #tpu.pipeline_mode<synchronous>, transform_indices = @transform_5, window_bounds = array<i64: 256, 256>}, {pipeline_mode = #tpu.pipeline_mode<synchronous>, transform_indices = @transform_6, window_bounds = array<i64: 256, 256>}, {pipeline_mode = #tpu.pipeline_mode<synchronous>, transform_indices = @transform_7, window_bounds = array<i64: 1, 256>}, {transform_indices = @transform_8, window_bounds = array<i64: 1, 16, 256>}]} {
    %c0 = arith.constant 0 : index
    %c0_0 = arith.constant 0 : index
    %c0_1 = arith.constant 0 : index
    %0 = vector.load %arg2[%c0, %c0_0, %c0_1] : memref<1x16x256xf32, #tpu.memory_space<vmem>>, vector<1x16x256xf32>
    %1 = vector.shape_cast %0 : vector<1x16x256xf32> to vector<16x256xf32>
    %c0_2 = arith.constant 0 : index
    %c0_3 = arith.constant 0 : index
    %2 = vector.load %arg5[%c0_2, %c0_3] : memref<256x256xf32, #tpu.memory_space<vmem>>, vector<256x256xf32>
    %cst = arith.constant dense<0.000000e+00> : vector<16x256xf32>
    %3 = tpu.matmul %1, %2, %cst {dimension_numbers = #tpu.dot_dimension_numbers<[1], [0], [0], [1], [0, 0, 1, 1], [], []>} : vector<16x256xf32>, vector<256x256xf32>, vector<16x256xf32> -> vector<16x256xf32>
    %c0_4 = arith.constant 0 : index
    %c0_5 = arith.constant 0 : index
    %c0_6 = arith.constant 0 : index
    %4 = vector.load %arg3[%c0_4, %c0_5, %c0_6] : memref<1x24x256xf32, #tpu.memory_space<vmem>>, vector<1x24x256xf32>
    %5 = vector.shape_cast %4 : vector<1x24x256xf32> to vector<24x256xf32>
    %c0_7 = arith.constant 0 : index
    %c0_8 = arith.constant 0 : index
    %6 = vector.load %arg6[%c0_7, %c0_8] : memref<256x256xf32, #tpu.memory_space<vmem>>, vector<256x256xf32>
    %cst_9 = arith.constant dense<0.000000e+00> : vector<24x256xf32>
    %7 = tpu.matmul %5, %6, %cst_9 {dimension_numbers = #tpu.dot_dimension_numbers<[1], [0], [0], [1], [0, 0, 1, 1], [], []>} : vector<24x256xf32>, vector<256x256xf32>, vector<24x256xf32> -> vector<24x256xf32>
    %c0_10 = arith.constant 0 : index
    %c0_11 = arith.constant 0 : index
    %c0_12 = arith.constant 0 : index
    %8 = vector.load %arg4[%c0_10, %c0_11, %c0_12] : memref<1x24x256xf32, #tpu.memory_space<vmem>>, vector<1x24x256xf32>
    %9 = vector.shape_cast %8 : vector<1x24x256xf32> to vector<24x256xf32>
    %c0_13 = arith.constant 0 : index
    %c0_14 = arith.constant 0 : index
    %10 = vector.load %arg7[%c0_13, %c0_14] : memref<256x256xf32, #tpu.memory_space<vmem>>, vector<256x256xf32>
    %cst_15 = arith.constant dense<0.000000e+00> : vector<24x256xf32>
    %11 = tpu.matmul %9, %10, %cst_15 {dimension_numbers = #tpu.dot_dimension_numbers<[1], [0], [0], [1], [0, 0, 1, 1], [], []>} : vector<24x256xf32>, vector<256x256xf32>, vector<24x256xf32> -> vector<24x256xf32>
    %12 = vector.shape_cast %3 : vector<16x256xf32> to vector<16x2x128xf32>
    %13 = tpu.transpose %12, [1, 0, 2] : vector<16x2x128xf32> -> vector<2x16x128xf32>
    %14 = vector.shape_cast %7 : vector<24x256xf32> to vector<24x2x128xf32>
    %15 = tpu.transpose %14, [1, 0, 2] : vector<24x2x128xf32> -> vector<2x24x128xf32>
    %16 = vector.shape_cast %11 : vector<24x256xf32> to vector<24x2x128xf32>
    %17 = tpu.transpose %16, [1, 0, 2] : vector<24x2x128xf32> -> vector<2x24x128xf32>
    "tpu.trace_start"() <{level = 10 : i32, message = "hqd,hkd->hqk"}> : () -> ()
    %cst_16 = arith.constant dense<0.000000e+00> : vector<2x16x24xf32>
    %18 = tpu.matmul %13, %15, %cst_16 {dimension_numbers = #tpu.dot_dimension_numbers<[2], [2], [1], [1], [0, 0, 0, 1, 1, 1], [0], [0]>} : vector<2x16x128xf32>, vector<2x24x128xf32>, vector<2x16x24xf32> -> vector<2x16x24xf32>
    "tpu.trace_stop"() : () -> ()
    %cst_17 = arith.constant dense<0xFF800000> : vector<2x16xf32>
    %19 = vector.multi_reduction <maximumf>, %18, %cst_17 [2] : vector<2x16x24xf32> to vector<2x16xf32>
    %20 = vector.shape_cast %19 : vector<2x16xf32> to vector<2x16x1xf32>
    %21 = vector.broadcast %20 : vector<2x16x1xf32> to vector<2x16x24xf32>
    %22 = arith.subf %18, %21 : vector<2x16x24xf32>
    %23 = math.exp %22 : vector<2x16x24xf32>
    %cst_18 = arith.constant dense<0.000000e+00> : vector<2x16xf32>
    %24 = vector.multi_reduction <add>, %23, %cst_18 [2] : vector<2x16x24xf32> to vector<2x16xf32>
    %25 = vector.shape_cast %24 : vector<2x16xf32> to vector<2x16x1xf32>
    "tpu.trace_start"() <{level = 10 : i32, message = "hqk,hkd->hqd"}> : () -> ()
    %cst_19 = arith.constant dense<0.000000e+00> : vector<2x16x128xf32>
    %26 = tpu.matmul %23, %17, %cst_19 {dimension_numbers = #tpu.dot_dimension_numbers<[2], [1], [1], [2], [0, 0, 0, 1, 1, 2], [0], [0]>} : vector<2x16x24xf32>, vector<2x24x128xf32>, vector<2x16x128xf32> -> vector<2x16x128xf32>
    "tpu.trace_stop"() : () -> ()
    %27 = tpu.reciprocal %25 : vector<2x16x1xf32> -> vector<2x16x1xf32>
    %28 = vector.broadcast %27 : vector<2x16x1xf32> to vector<2x16x128xf32>
    %29 = arith.mulf %26, %28 : vector<2x16x128xf32>
    %30 = tpu.transpose %29, [1, 0, 2] : vector<2x16x128xf32> -> vector<16x2x128xf32>
    %31 = vector.shape_cast %30 : vector<16x2x128xf32> to vector<16x256xf32>
    %c0_20 = arith.constant 0 : index
    %c0_21 = arith.constant 0 : index
    %32 = vector.load %arg8[%c0_20, %c0_21] : memref<256x256xf32, #tpu.memory_space<vmem>>, vector<256x256xf32>
    %cst_22 = arith.constant dense<0.000000e+00> : vector<16x256xf32>
    %33 = tpu.matmul %31, %32, %cst_22 {dimension_numbers = #tpu.dot_dimension_numbers<[1], [0], [0], [1], [0, 0, 1, 1], [], []>} : vector<16x256xf32>, vector<256x256xf32>, vector<16x256xf32> -> vector<16x256xf32>
    %c0_23 = arith.constant 0 : index
    %c0_24 = arith.constant 0 : index
    %34 = vector.load %arg9[%c0_23, %c0_24] : memref<1x256xf32, #tpu.memory_space<vmem>>, vector<1x256xf32>
    %35 = vector.broadcast %34 : vector<1x256xf32> to vector<16x256xf32>
    %36 = arith.addf %33, %35 : vector<16x256xf32>
    %c0_25 = arith.constant 0 : index
    %c0_26 = arith.constant 0 : index
    %c0_27 = arith.constant 0 : index
    %37 = vector.load %arg10[%c0_25, %c0_26, %c0_27] : memref<1x16x256xf32, #tpu.memory_space<vmem>>, vector<1x16x256xf32>
    %38 = vector.shape_cast %37 : vector<1x16x256xf32> to vector<16x256xf32>
    %39 = vector.shape_cast %36 : vector<16x256xf32> to vector<1x16x256xf32>
    tpu.vector_store %arg10[%c0_25, %c0_26, %c0_27], %39 {strides = array<i32>} : memref<1x16x256xf32, #tpu.memory_space<vmem>>, vector<1x16x256xf32>,
    return
  }
  func.func @transform_0(%arg0: i32, %arg1: i32) -> (i32, i32, i32) {
    %c0_i32 = arith.constant 0 : i32
    %c0_i32_0 = arith.constant 0 : i32
    return %arg0, %arg1, %c0_i32 : i32, i32, i32
  }
  func.func @transform_1(%arg0: i32, %arg1: i32) -> (i32, i32, i32) {
    %c0_i32 = arith.constant 0 : i32
    %c0_i32_0 = arith.constant 0 : i32
    %c0_i32_1 = arith.constant 0 : i32
    return %arg0, %c0_i32, %c0_i32_0 : i32, i32, i32
  }
  func.func @transform_2(%arg0: i32, %arg1: i32) -> (i32, i32, i32) {
    %c0_i32 = arith.constant 0 : i32
    %c0_i32_0 = arith.constant 0 : i32
    %c0_i32_1 = arith.constant 0 : i32
    return %arg0, %c0_i32, %c0_i32_0 : i32, i32, i32
  }
  func.func @transform_3(%arg0: i32, %arg1: i32) -> (i32, i32) {
    %c0_i32 = arith.constant 0 : i32
    %c0_i32_0 = arith.constant 0 : i32
    %c0_i32_1 = arith.constant 0 : i32
    return %c0_i32, %c0_i32_0 : i32, i32
  }
  func.func @transform_4(%arg0: i32, %arg1: i32) -> (i32, i32) {
    %c0_i32 = arith.constant 0 : i32
    %c0_i32_0 = arith.constant 0 : i32
    %c0_i32_1 = arith.constant 0 : i32
    return %c0_i32, %c0_i32_0 : i32, i32
  }
  func.func @transform_5(%arg0: i32, %arg1: i32) -> (i32, i32) {
    %c0_i32 = arith.constant 0 : i32
    %c0_i32_0 = arith.constant 0 : i32
    %c0_i32_1 = arith.constant 0 : i32
    return %c0_i32, %c0_i32_0 : i32, i32
  }
  func.func @transform_6(%arg0: i32, %arg1: i32) -> (i32, i32) {
    %c0_i32 = arith.constant 0 : i32
    %c0_i32_0 = arith.constant 0 : i32
    %c0_i32_1 = arith.constant 0 : i32
    return %c0_i32, %c0_i32_0 : i32, i32
  }
  func.func @transform_7(%arg0: i32, %arg1: i32) -> (i32, i32) {
    %c0_i32 = arith.constant 0 : i32
    %c0_i32_0 = arith.constant 0 : i32
    %c0_i32_1 = arith.constant 0 : i32
    return %c0_i32, %c0_i32_0 : i32, i32
  }
  func.func @transform_8(%arg0: i32, %arg1: i32) -> (i32, i32, i32) {
    %c0_i32 = arith.constant 0 : i32
    %c0_i32_0 = arith.constant 0 : i32
    return %arg0, %arg1, %c0_i32 : i32, i32, i32
  }
}

</mosaic_0001>

<bundles_post_ra>
// kernel: tpu_custom_call.1
= control target key start
LH: loop header
LB: loop body
LE: loop exit
PB: predicated region body
PF: predicated region fallthrough
CT: control target
= control target key end

     0   :  { %s3887_s0 = inlined_call_operand.hbm [shape: f32[2,16,256], index: 0, kind: input, shape index: {}]   ;;  %s3888_s1 = inlined_call_operand.hbm [shape: f32[2,24,256], index: 1, kind: input, shape index: {}]   ;;  %s3889_s2 = inlined_call_operand.hbm [shape: f32[2,24,256], index: 2, kind: input, shape index: {}]   ;;  %s3890_s3 = inlined_call_operand.hbm [shape: f32[256,256], index: 3, kind: input, shape index: {}]   ;;  %s3891_s4 = inlined_call_operand.hbm [shape: f32[256,256], index: 4, kind: input, shape index: {}]   ;;  %s3892_s5 = inlined_call_operand.hbm [shape: f32[256,256], index: 5, kind: input, shape index: {}]   ;;  %s3893_s6 = inlined_call_operand.hbm [shape: f32[256,256], index: 6, kind: input, shape index: {}]   ;;  %s3894_s7 = inlined_call_operand.vmem [shape: f32[1,256], index: 7, kind: input, shape index: {}]   ;;  %s3895_s8 = inlined_call_operand.hbm [shape: f32[2,16,256], index: 8, kind: output, shape index: {}]  }
   0x1   :  { %3911 = sst [smem:[#allocation26_spill]] %s3888_s1 }
   0x2   :  { %3912 = sst [smem:[#allocation27_spill]] %s3890_s3 }
   0x3   :  { %3913 = sst [smem:[#allocation28_spill]] %s3891_s4 }
   0x4   :  { %3914 = sst [smem:[#allocation29_spill]] %s3892_s5 }
   0x5   :  { %3915 = sst [smem:[#allocation30_spill]] %s3893_s6 }
   0x6   :  { %13 = vsyncpa [#allocation3], 0 }
   0x7   :  { %15 = vsyncpa [#allocation3 + $0x1], 0 }
   0x8   :  { %16 = vsyncpa [#allocation6], 0 }
   0x9   :  { %18 = vsyncpa [#allocation6 + $0x1], 0 }
   0xa   :  { %19 = vsyncpa [#allocation9], 0 }
   0xb   :  { %20 = vsyncpa [#allocation12], 0 }
   0xc   :  { %21 = vsyncpa [#allocation4], 0 }
   0xd   :  { %23 = vsyncpa [#allocation4 + $0x1], 0  ;;  %s3380_s27 = smov 0   ;;  %s3382_s28 = smov 0  }
   0xe   :  { %s3384_s29 = smov 0   ;;  %s3386_s30 = smov 0  }
   0xf   :  { %s3388_s9 = smov 0   ;;  %s3390_s10 = smov 0  }
  0x10 LB: > { %3916 = sst [smem:[#allocation20_spill]] %s3298_s27  ;;  %s3411_s11 = sadd.s32 4294967295, %s3318_s10   ;;  %s3318_s10 = sphi %s3390_s10, %s29_s10   ;;  %s3314_s9 = sphi %s3388_s9, %s3956_s9   ;;  %s3310_s30 = sphi %s3386_s30, %s3955_s30   ;;  %s3306_s29 = sphi %s3384_s29, %s3951_s29   ;;  %s3302_s28 = sphi %s3382_s28, %s3954_s28   ;;  %s3298_s27 = sphi %s3380_s27, %s3953_s27  }
  0x11   : > { %3917 = sst [smem:[#allocation21_spill]] %s3306_s29  ;;  %s2791_s12 = sadd.s32 4294967294, %s3318_s10  }
  0x12   : > { %3918 = sst [smem:[#allocation22_spill]] %s3318_s10  ;;  %p63_p0 = scmp.ne.s32.totalorder %s3302_s28, %s3298_s27 }
  0x13   : > { %p3896_p1 = scmp.eq.s32.totalorder %s3411_s11, 0  ;;  %p246_p2 = scmp.eq.s32.totalorder %s3411_s11, 1 }
  0x14   : > { %p252_p3 = scmp.eq.s32.totalorder %s2791_s12, 1  ;;  %p2792_p5 = scmp.ge.s32.totalorder %s3318_s10, 1 }
  0x15   : > { %p3420_p4 = por %p3896_p1, %p63_p0  ;;  %p259_p7 = scmp.lt.s32.totalorder %s3318_s10, 3 }
  0x16   : > { %p3425_p6 = por %p252_p3, %p63_p0  ;;  %s3320_s16 = smov [#allocation8]  }
  0x17   : > { %p3430_p8 = pnand %p2792_p5, %p259_p7  ;;  %s271_s17 = sshll.u32 %s3320_s16, 4  ;;  %s272_s17 = int_to_ptr.vmem [resolvable:$true] %s271_s17 }
  0x18   : > { %s3920_s14 = scalar_select %p3425_p6, 1, 0 }
  0x19   : > { %p2926_p9 = pneg %p3430_p8  ;;  %s3321_s19 = smov [#allocation11]  }
  0x1a   : > { %3921 = sst [smem:[#allocation23_spill]] %s3920_s14  ;;  %s297_s20 = sshll.u32 %s3321_s19, 4  ;;  %s298_s20 = int_to_ptr.vmem [resolvable:$true] %s297_s20 }
  0x1b   : > { %p3439_p11 = pnand %p2926_p9, %p3896_p1  ;;  %s3049_s21 = scalar_lea.vmem %s272_s17, 8192 }
  0x1c   : > { %p3050_p13 = scmp.ne.s32.totalorder %s272_s17, %s3049_s21  ;;  %p3057_p5 = scmp.lt.s32.totalorder %s272_s17, %s272_s17 }
  0x1d   : > { %p3904_p12 = pneg %p3439_p11  ;;  %p3058_p7 = scmp.lt.s32.totalorder %s3049_s21, %s3049_s21 }
  0x1f   : > { %p3052_p0 = pnand %p3050_p13, %p3904_p12  ;;  %p3059_p10 = por %p3058_p7, %p3057_p5 }
  0x21   : > { %p3053_p3 = pneg %p3052_p0 }
  0x23   : > { %p3060_p9 = pnand %p3059_p10, %p3053_p3 }
  0x25   : > { %3063 = shalt.err (!%p3060_p9)
}
  0x26   : > { %s3897_s22 = smov 256   ;;  %s3899_s23 = smov 16  }
  0x27   : > { %s3924_s3 = sld [smem:[#allocation27_spill]]  ;;  %s3075_s26 = scalar_lea.vmem %s298_s20, 8192 }
  0x28   : > { %p3076_p13 = scmp.ne.s32.totalorder %s298_s20, %s3075_s26  ;;  %p3083_p10 = scmp.lt.s32.totalorder %s298_s20, %s298_s20 }
  0x29   : > { %p3084_p3 = scmp.lt.s32.totalorder %s3075_s26, %s3075_s26 }
  0x2a   : > { %p3078_p0 = pnand %p3076_p13, %p3904_p12 }
  0x2b   : > { %p3085_p7 = por %p3084_p3, %p3083_p10 }
  0x2c   : > { %p3079_p5 = pneg %p3078_p0 }
  0x2d   : > { %2929 = dma.hbm_to_vmem [thread:$0]  (!%p3439_p11), %s3924_s3, 8192, %s272_s17, [#allocation9], %s3897_s22, %s3897_s22, %s3899_s23  }
  0x2e   : > { %p3086_p9 = pnand %p3085_p7, %p3079_p5 }
  0x30   : > { %3089 = shalt.err (!%p3086_p9)
}
  0x31   : > { %s3925_s5 = sld [smem:[#allocation29_spill]]  ;;  %s41_s17 = sadd.s32 1, %s3314_s9 }
  0x32   : > { %s50_s19 = sadd.s32 1, %s3306_s29  ;;  %p43_p13 = scmp.ge.s32.totalorder %s41_s17, 2 }
  0x33   : > { %p57_p0 = scmp.ne.s32.totalorder %s3306_s29, %s3302_s28  ;;  %p58_p5 = scmp.eq.s32.totalorder %s3318_s10, 0 }
  0x34   : > { %p2957_p10 = scmp.lt.s32.totalorder %s3318_s10, 2  ;;  %s3958_s17 = smov (%p43_p13, %s41_s17), 0 }
  0x35   : > { %3926 = sst [smem:[#allocation24_spill]] %s3958_s17  ;;  %p59_p3 = por %p58_p5, %p57_p0 }
  0x36   : > { %p3477_p7 = por %p246_p2, %p57_p0  ;;  %s45_s24 = ssub.s32 %s3314_s9, %s3958_s17 }
  0x37   : > { %2935 = dma.hbm_to_vmem [thread:$0]  (!%p3439_p11), %s3925_s5, 8192, %s298_s20, [#allocation12], %s3897_s22, %s3897_s22, %s3899_s23  }
  0x38   : > { %s3484_s20 = sand.u32 1, %s3306_s29   ;;  %p48_p9 = scmp.eq.s32.totalorder %s45_s24, 0 }
  0x39   : > { %p3486_p1 = pnand %p2957_p10, %p59_p3  ;;  %s351_s26 = sand.u32 1, %s3318_s10  }
  0x3a   : > { %s3905_s12 = smul.u32 48, %s3484_s20  ;;  %s3930_s1 = sld [smem:[#allocation26_spill]] }
  0x3b   : > { %s3493_s16 = scalar_select %p48_p9, %s3306_s29, %s50_s19  }
  0x3c   : > { %s3906_s22 = smul.u32 768, %s3314_s9  ;;  %s355_s23 = scalar_lea.vmem [#allocation5], %s3905_s12 }
  0x3d   : > { %3929 = sst [smem:[#allocation25_spill]] %s3493_s16  ;;  %s362_s3 = sshll.u32 %s355_s23, 4  ;;  %s363_s3 = int_to_ptr.vmem [resolvable:$true] %s362_s3 }
  0x3e   : > { %s3503_s24 = scalar_lea.sflag [#allocation6], %s351_s26  ;;  %p3907_p2 = pneg %p3486_p1 }
  0x3f   : > { %s3103_s27 = scalar_lea.vmem %s363_s3, 768  ;;  %s3324_s19 = smov [#allocation5]  }
  0x40   : > { %s361_s14 = scalar_lea.hbm %s3930_s1, %s3906_s22  ;;  %p3104_p13 = scmp.ne.s32.totalorder %s363_s3, %s3103_s27 }
  0x41   : > { %s3108_s16 = sshll.u32 %s3324_s19, 4  ;;  %s3109_s16 = int_to_ptr.vmem [resolvable:$false] %s3108_s16 }
  0x42   : > { %p3106_p0 = pnand %p3104_p13, %p3907_p2  ;;  %s3110_s23 = scalar_lea.vmem %s3109_s16, 1536 }
  0x43   : > { %p3111_p10 = scmp.lt.s32.totalorder %s363_s3, %s3109_s16  ;;  %p3112_p3 = scmp.lt.s32.totalorder %s3110_s23, %s3103_s27 }
  0x44   : > { %p3107_p5 = pneg %p3106_p0 }
  0x45   : > { %p3113_p9 = por %p3112_p3, %p3111_p10 }
  0x47   : > { %p3114_p12 = pnand %p3113_p9, %p3107_p5 }
  0x49   : > { %3117 = shalt.err (!%p3114_p12)
}
  0x4a   : > { %s3931_s5 = smov 16   ;;  %s3932_s17 = smov 256  }
  0x4b   : > { %2945 = dma.hbm_to_vmem [thread:$0]  (!%p3486_p1), %s361_s14, 768, %s363_s3, %s3503_s24, %s3932_s17, %s3932_s17, %s3931_s5  }
  0x4c   : > { %s3325_s26 = smov [#allocation10]   ;;  %s3326_s22 = smov [#allocation13]  }
  0x4d   : > { %s284_s12 = sshll.u32 %s3325_s26, 4  ;;  %s310_s19 = sshll.u32 %s3326_s22, 4  ;;  %s285_s12 = int_to_ptr.vmem [resolvable:$true] %s284_s12  ;;  %s311_s19 = int_to_ptr.vmem [resolvable:$true] %s310_s19 }
  0x4e   : > { %s3129_s1 = scalar_lea.vmem %s285_s12, 8192  ;;  %p3933_p0 = pneg %p3439_p11 }
  0x4f   : > { %p3130_p13 = scmp.ne.s32.totalorder %s285_s12, %s3129_s1  ;;  %p3137_p12 = scmp.lt.s32.totalorder %s285_s12, %s285_s12 }
  0x50   : > { %p3138_p3 = scmp.lt.s32.totalorder %s3129_s1, %s3129_s1 }
  0x51   : > { %p3132_p10 = pnand %p3130_p13, %p3933_p0 }
  0x52   : > { %p3139_p9 = por %p3138_p3, %p3137_p12 }
  0x53   : > { %p3133_p5 = pneg %p3132_p10 }
  0x55   : > { %p3140_p2 = pnand %p3139_p9, %p3133_p5 }
  0x57   : > { %3143 = shalt.err (!%p3140_p2)
}
  0x58   : > { %s3934_s4 = sld [smem:[#allocation28_spill]]  ;;  %s3155_s14 = scalar_lea.vmem %s311_s19, 8192 }
  0x59   : > { %p3156_p6 = scmp.ne.s32.totalorder %s311_s19, %s3155_s14  ;;  %p3935_p13 = pmov %p3933_p0 }
  0x5a   : > { %p3163_p12 = scmp.lt.s32.totalorder %s311_s19, %s311_s19  ;;  %p3164_p5 = scmp.lt.s32.totalorder %s3155_s14, %s3155_s14 }
  0x5b   : > { %p3158_p0 = pnand %p3156_p6, %p3935_p13 }
  0x5c   : > { %p3165_p2 = por %p3164_p5, %p3163_p12 }
  0x5d   : > { %p3159_p10 = pneg %p3158_p0 }
  0x5e   : > { %2932 = dma.hbm_to_vmem [thread:$0]  (!%p3439_p11), %s3934_s4, 8192, %s285_s12, [#allocation9], %s3932_s17, %s3932_s17, %s3931_s5  }
  0x5f   : > { %p3166_p3 = pnand %p3165_p2, %p3159_p10 }
  0x61   : > { %3169 = shalt.err (!%p3166_p3)
}
  0x62   : > { %s3936_s6 = sld [smem:[#allocation30_spill]]  ;;  %s2798_s12 = sshll.u32 %s3484_s20, 5 }
  0x63   : > { %s2839_s16 = sshll.u32 %s3314_s9, 9  ;;  %s331_s27 = scalar_lea.vmem [#allocation2], %s2798_s12 }
  0x64   : > { %s340_s3 = scalar_lea.hbm %s3887_s0, %s2839_s16  ;;  %s341_s18 = sshll.u32 %s331_s27, 4  ;;  %s342_s18 = int_to_ptr.vmem [resolvable:$true] %s341_s18 }
  0x65   : > { %s3937_s14 = smul.u32 768, %s3314_s9  ;;  %s328_s22 = scalar_lea.sflag [#allocation3], %s3484_s20 }
  0x66   : > { %s3183_s10 = scalar_lea.vmem %s342_s18, 512 }
  0x67   : > { %s3548_s1 = scalar_lea.hbm %s3889_s2, %s3937_s14  ;;  %p3184_p6 = scmp.ne.s32.totalorder %s342_s18, %s3183_s10 }
  0x68   : > { %2938 = dma.hbm_to_vmem [thread:$0]  (!%p3439_p11), %s3936_s6, 8192, %s311_s19, [#allocation12], %s3932_s17, %s3932_s17, %s3931_s5  }
  0x69   : > { %p3938_p11 = pneg %p3486_p1  ;;  %s3327_s19 = smov [#allocation2]  }
  0x6a   : > { %s3188_s6 = sshll.u32 %s3327_s19, 4  ;;  %s3189_s6 = int_to_ptr.vmem [resolvable:$false] %s3188_s6 }
  0x6b   : > { %p3186_p9 = pnand %p3184_p6, %p3938_p11  ;;  %s3190_s16 = scalar_lea.vmem %s3189_s6, 1024 }
  0x6c   : > { %p3191_p0 = scmp.lt.s32.totalorder %s342_s18, %s3189_s6  ;;  %p3192_p10 = scmp.lt.s32.totalorder %s3190_s16, %s3183_s10 }
  0x6d   : > { %p3187_p13 = pneg %p3186_p9 }
  0x6e   : > { %p3193_p12 = por %p3192_p10, %p3191_p0 }
  0x70   : > { %p3194_p5 = pnand %p3193_p12, %p3187_p13 }
  0x72   : > { %3197 = shalt.err (!%p3194_p5)
}
  0x73   : > { %2942 = dma.hbm_to_vmem [thread:$0]  (!%p3486_p1), %s340_s3, 512, %s342_s18, %s328_s22, %s3932_s17, %s3932_s17, %s3931_s5  }
  0x74   : > { %s3939_s4 = smul.u32 48, %s3484_s20  ;;  %p3940_p3 = pmov %p3938_p11 }
  0x75   : > { %s3328_s6 = smov [#allocation7]  }
  0x76   : > { %s376_s29 = scalar_lea.vmem [#allocation7], %s3939_s4  ;;  %s3216_s10 = sshll.u32 %s3328_s6, 4  ;;  %s3217_s10 = int_to_ptr.vmem [resolvable:$false] %s3216_s10 }
  0x77   : > { %s383_s12 = sshll.u32 %s376_s29, 4  ;;  %s3218_s26 = scalar_lea.vmem %s3217_s10, 1536  ;;  %s384_s12 = int_to_ptr.vmem [resolvable:$true] %s383_s12 }
  0x78   : > { %s3211_s23 = scalar_lea.vmem %s384_s12, 768  ;;  %p3219_p9 = scmp.lt.s32.totalorder %s384_s12, %s3217_s10 }
  0x79   : > { %p3212_p2 = scmp.ne.s32.totalorder %s384_s12, %s3211_s23  ;;  %p3220_p13 = scmp.lt.s32.totalorder %s3218_s26, %s3211_s23 }
  0x7b   : > { %p3214_p6 = pnand %p3212_p2, %p3940_p3  ;;  %p3221_p0 = por %p3220_p13, %p3219_p9 }
  0x7d   : > { %p3215_p11 = pneg %p3214_p6 }
  0x7f   : > { %p3222_p10 = pnand %p3221_p0, %p3215_p11 }
  0x81   : > { %3225 = shalt.err (!%p3222_p10)
}
  0x82   : > { %2948 = dma.hbm_to_vmem [thread:$0]  (!%p3486_p1), %s3548_s1, 768, %s384_s12, %s3503_s24, %s3932_s17, %s3932_s17, %s3931_s5  }
  0x83   : > { %395 = sbr.rel (%p3430_p8) target bundleno = 1241 (0x4d9), region = 52  ;;  %s3574_s20 = sand.u32 (!%p3430_p8), 1, %s3302_s28  }
  0x84   : > { %s2804_s3 = sshll.u32 (!%p3430_p8), %s3574_s20, 5  ;;  %s398_s27 = scalar_lea.sflag (!%p3430_p8), [#allocation3], %s3574_s20 }
  0x85   : > { %s3580_s25 = scalar_lea.vmem (!%p3430_p8), [#allocation2], %s2804_s3 }
  0x88   : > { %3277 = dma.done.wait (%p3420_p4), %s398_s27, 512  }
  0x89   : > { %3279 = vsyncadd (%p3420_p4), %s398_s27, 4294966784  ;;  %s406_s15 = sand.u32 1, %s3411_s11   ;;  %s2901_s24 = smul.u32 48, %s3574_s20 }
  0x8a   : > { %s407_s5 = scalar_lea.sflag [#allocation6], %s406_s15 }
  0x8b   : > { %s3588_s17 = scalar_lea.vmem [#allocation5], %s2901_s24 }
  0x8c   : > { %3281 = dma.done.wait (%p3420_p4), %s407_s5, 1536  }
  0x8d   : > { %3283 = vsyncadd (%p3420_p4), %s407_s5, 4294965760  ;;  %s3594_s18 = scalar_lea.vmem [#allocation7], %s2901_s24  ;;  %p3941_p1 = scmp.eq.s32.totalorder %s3411_s11, 0 }
  0x8f   : > { %3285 = dma.done.wait (%p3941_p1), [#allocation9], 16384   ;;  %p3942_p8 = pmov %p3941_p1 }
  0x90   : > { %p3943_p12 = pmov %p3941_p1 }
  0x91   : > { %3287 = vsyncadd (%p3942_p8), [#allocation9], 4294950912 }
  0x92   : > { %3289 = dma.done.wait (%p3943_p12), [#allocation12], 16384   ;;  %p3944_p5 = pmov %p3941_p1 }
  0x93   : > { %v662_v0 = vld [vmem:[#allocation10 + $0xf8] sm:$0xff]  ;;  %v661_v1 = vld [vmem:[#allocation10 + $0xf0] sm:$0xff]  ;;  %v660_v2 = vld [vmem:[#allocation10 + $0xe8] sm:$0xff]  ;;  %vm2009_vm0 = vcmask 195584   ;;  %s477_s14 = scalar_lea.vmem [#allocation14], %s2804_s3  ;;  %s2840_s22 = sshll.u32 %s3310_s30, 9 }
  0x94   : > { %3291 = vsyncadd (%p3944_p5), [#allocation12], 4294950912  ;;  %695 = vmatprep.subr.mxu1 %v662_v0  ;;  %v659_v3 = vld [vmem:[#allocation10 + $0xe0] sm:$0xff]  ;;  %v658_v4 = vld [vmem:[#allocation10 + $0xd8] sm:$0xff]  ;;  %s2622_s1 = sshll.u32 %s477_s14, 4  ;;  %s3839_s4 = scalar_lea.hbm %s3895_s8, %s2840_s22  ;;  %s3834_s1 = int_to_ptr.vmem [resolvable:$true] %s2622_s1 }
  0x95   : > { %696 = vmatpush1.msra.mxu1 %v661_v1  ;;  %v657_v5 = vld [vmem:[#allocation10 + $0xd0] sm:$0xff]  ;;  %v656_v6 = vld [vmem:[#allocation10 + $0xc8] sm:$0xff]  ;;  %v515_v7 = vld [vmem:[#allocation8 + $0xf8] sm:$0xff]  ;;  %s2606_s29 = scalar_lea.sflag [#allocation4], %s3574_s20  ;;  %s3226_s12 = scalar_lea.vmem %s3834_s1, 512 }
  0x96   : > { %697 = vmatprep.subr.mxu1 %v660_v2  ;;  %v655_v8 = vld [vmem:[#allocation10 + $0xc0] sm:$0xff]  ;;  %548 = vmatprep.subr.mxu0 %v515_v7  ;;  %v514_v9 = vld [vmem:[#allocation8 + $0xf0] sm:$0xff]  ;;  %v513_v10 = vld [vmem:[#allocation8 + $0xe8] sm:$0xff]  ;;  %p3227_p4 = scmp.ne.s32.totalorder %s3834_s1, %s3226_s12  ;;  %s3332_s30 = smov [#allocation14]  }
  0x97   : > { %698 = vmatpush1.msra.mxu1 %v659_v3  ;;  %v654_v11 = vld [vmem:[#allocation10 + $0xb8] sm:$0xff]  ;;  %549 = vmatpush1.msra.mxu0 %v514_v9  ;;  %v512_v12 = vld [vmem:[#allocation8 + $0xe0] sm:$0xff]  ;;  %v653_v13 = vld [vmem:[#allocation10 + $0xb0] sm:$0xff]  ;;  %s3230_s23 = sshll.u32 %s3332_s30, 4  ;;  %s3231_s23 = int_to_ptr.vmem [resolvable:$false] %s3230_s23 }
  0x98   : > { %699 = vmatprep.subr.mxu1 %v658_v4  ;;  %550 = vmatprep.subr.mxu0 %v513_v10  ;;  %v511_v14 = vld [vmem:[#allocation8 + $0xd8] sm:$0xff]  ;;  %v510_v15 = vld [vmem:[#allocation8 + $0xd0] sm:$0xff]  ;;  %v652_v16 = vld [vmem:[#allocation10 + $0xa8] sm:$0xff]  ;;  %p3228_p2 = pnand %p3227_p4, %p3477_p7  ;;  %s3232_s6 = scalar_lea.vmem %s3231_s23, 1024 }
  0x99   : > { %700 = vmatpush1.msra.mxu1 %v657_v5  ;;  %551 = vmatpush1.msra.mxu0 %v512_v12  ;;  %v509_v17 = vld [vmem:[#allocation8 + $0xc8] sm:$0xff]  ;;  %v651_v18 = vld [vmem:[#allocation10 + $0xa0] sm:$0xff]  ;;  %v650_v20 = vld [vmem:[#allocation10 + $0x98] sm:$0xff]  ;;  %p3233_p6 = scmp.lt.s32.totalorder %s3834_s1, %s3231_s23  ;;  %p3234_p11 = scmp.lt.s32.totalorder %s3232_s6, %s3226_s12 }
  0x9a   : > { %701 = vmatprep.subr.mxu1 %v656_v6  ;;  %552 = vmatprep.subr.mxu0 %v511_v14  ;;  %v508_v19 = vld [vmem:[#allocation8 + $0xc0] sm:$0xff]  ;;  %v507_v21 = vld [vmem:[#allocation8 + $0xb8] sm:$0xff]  ;;  %v649_v22 = vld [vmem:[#allocation10 + $0x90] sm:$0xff]  ;;  %p3229_p3 = pneg %p3228_p2 }
  0x9b   : > { %702 = vmatpush1.msra.mxu1 %v655_v8  ;;  %553 = vmatpush1.msra.mxu0 %v510_v15  ;;  %v506_v23 = vld [vmem:[#allocation8 + $0xb0] sm:$0xff]  ;;  %v648_v24 = vld [vmem:[#allocation10 + $0x88] sm:$0xff]  ;;  %v647_v26 = vld [vmem:[#allocation10 + $0x80] sm:$0xff]  ;;  %p3235_p9 = por %p3234_p11, %p3233_p6 }
  0x9c   : > { %703 = vmatprep.subr.mxu1 %v654_v11  ;;  %554 = vmatprep.subr.mxu0 %v509_v17  ;;  %v505_v25 = vld [vmem:[#allocation8 + $0xa8] sm:$0xff]  ;;  %v504_v27 = vld [vmem:[#allocation8 + $0xa0] sm:$0xff]  ;;  %v646_v28 = vld [vmem:[#allocation10 + $0x78] sm:$0xff] }
  0x9d   : > { %704 = vmatpush1.msra.mxu1 %v653_v13  ;;  %555 = vmatpush1.msra.mxu0 %v508_v19  ;;  %v503_v29 = vld [vmem:[#allocation8 + $0x98] sm:$0xff]  ;;  %v645_v30 = vld [vmem:[#allocation10 + $0x70] sm:$0xff]  ;;  %v644_v32 = vld [vmem:[#allocation10 + $0x68] sm:$0xff]  ;;  %p3236_p13 = pnand %p3235_p9, %p3229_p3 }
  0x9e   : > { %705 = vmatprep.subr.mxu1 %v652_v16  ;;  %556 = vmatprep.subr.mxu0 %v507_v21  ;;  %v502_v31 = vld [vmem:[#allocation8 + $0x90] sm:$0xff]  ;;  %v501_v33 = vld [vmem:[#allocation8 + $0x88] sm:$0xff]  ;;  %v643_v34 = vld [vmem:[#allocation10 + $0x60] sm:$0xff] }
  0x9f   : > { %706 = vmatpush1.msra.mxu1 %v651_v18  ;;  %557 = vmatpush1.msra.mxu0 %v506_v23  ;;  %v500_v35 = vld [vmem:[#allocation8 + $0x80] sm:$0xff]  ;;  %v642_v36 = vld [vmem:[#allocation10 + $0x58] sm:$0xff]  ;;  %v641_v38 = vld [vmem:[#allocation10 + $0x50] sm:$0xff] }
  0xa0   : > { %707 = vmatprep.subr.mxu1 %v650_v20  ;;  %558 = vmatprep.subr.mxu0 %v505_v25  ;;  %v499_v37 = vld [vmem:[#allocation8 + $0x78] sm:$0xff]  ;;  %v498_v39 = vld [vmem:[#allocation8 + $0x70] sm:$0xff]  ;;  %v640_v40 = vld [vmem:[#allocation10 + $0x48] sm:$0xff] }
  0xa1   : > { %708 = vmatpush1.msra.mxu1 %v649_v22  ;;  %559 = vmatpush1.msra.mxu0 %v504_v27  ;;  %v497_v41 = vld [vmem:[#allocation8 + $0x68] sm:$0xff]  ;;  %v639_v42 = vld [vmem:[#allocation10 + $0x40] sm:$0xff]  ;;  %v638_v44 = vld [vmem:[#allocation10 + $0x38] sm:$0xff] }
  0xa2   : > { %709 = vmatprep.subr.mxu1 %v648_v24  ;;  %560 = vmatprep.subr.mxu0 %v503_v29  ;;  %v496_v43 = vld [vmem:[#allocation8 + $0x60] sm:$0xff]  ;;  %v495_v45 = vld [vmem:[#allocation8 + $0x58] sm:$0xff]  ;;  %v637_v46 = vld [vmem:[#allocation10 + $0x30] sm:$0xff] }
  0xa3   : > { %710 = vmatpush1.msra.mxu1 %v647_v26  ;;  %561 = vmatpush1.msra.mxu0 %v502_v31  ;;  %v494_v47 = vld [vmem:[#allocation8 + $0x50] sm:$0xff]  ;;  %v636_v48 = vld [vmem:[#allocation10 + $0x28] sm:$0xff]  ;;  %v635_v50 = vld [vmem:[#allocation10 + $0x20] sm:$0xff] }
  0xa4   : > { %711 = vmatprep.subr.mxu1 %v646_v28  ;;  %562 = vmatprep.subr.mxu0 %v501_v33  ;;  %v493_v49 = vld [vmem:[#allocation8 + $0x48] sm:$0xff]  ;;  %v492_v51 = vld [vmem:[#allocation8 + $0x40] sm:$0xff]  ;;  %v634_v52 = vld [vmem:[#allocation10 + $0x18] sm:$0xff] }
  0xa5   : > { %712 = vmatpush1.msra.mxu1 %v645_v30  ;;  %563 = vmatpush1.msra.mxu0 %v500_v35  ;;  %v491_v53 = vld [vmem:[#allocation8 + $0x38] sm:$0xff]  ;;  %v633_v54 = vld [vmem:[#allocation10 + $0x10] sm:$0xff]  ;;  %v632_v56 = vld [vmem:[#allocation10 + $0x8] sm:$0xff] }
  0xa6   : > { %713 = vmatprep.subr.mxu1 %v644_v32  ;;  %564 = vmatprep.subr.mxu0 %v499_v37  ;;  %v490_v55 = vld [vmem:[#allocation8 + $0x30] sm:$0xff]  ;;  %v489_v57 = vld [vmem:[#allocation8 + $0x28] sm:$0xff]  ;;  %v631_v58 = vld [vmem:[#allocation10] sm:$0xff] }
  0xa7   : > { %714 = vmatpush1.msra.mxu1 %v643_v34  ;;  %565 = vmatpush1.msra.mxu0 %v498_v39  ;;  %v488_v59 = vld [vmem:[#allocation8 + $0x20] sm:$0xff]  ;;  %v694_v60 = vld [vmem:[#allocation10 + $0x1f8] sm:$0xff]  ;;  %v693_v62 = vld [vmem:[#allocation10 + $0x1f0] sm:$0xff] }
  0xa8   : > { %715 = vmatprep.subr.mxu1 %v642_v36  ;;  %566 = vmatprep.subr.mxu0 %v497_v41  ;;  %v487_v61 = vld [vmem:[#allocation8 + $0x18] sm:$0xff]  ;;  %v486_v63 = vld [vmem:[#allocation8 + $0x10] sm:$0xff]  ;;  %v692_v0 = vld [vmem:[#allocation10 + $0x1e8] sm:$0xff] }
  0xa9   : > { %716 = vmatpush1.msra.mxu1 %v641_v38  ;;  %567 = vmatpush1.msra.mxu0 %v496_v43  ;;  %v485_v1 = vld [vmem:[#allocation8 + $0x8] sm:$0xff]  ;;  %v691_v2 = vld [vmem:[#allocation10 + $0x1e0] sm:$0xff]  ;;  %v690_v4 = vld [vmem:[#allocation10 + $0x1d8] sm:$0xff] }
  0xaa   : > { %717 = vmatprep.subr.mxu1 %v640_v40  ;;  %568 = vmatprep.subr.mxu0 %v495_v45  ;;  %v484_v3 = vld [vmem:[#allocation8] sm:$0xff]  ;;  %v547_v5 = vld [vmem:[#allocation8 + $0x1f8] sm:$0xff]  ;;  %v689_v6 = vld [vmem:[#allocation10 + $0x1d0] sm:$0xff] }
  0xab   : > { %718 = vmatpush1.msra.mxu1 %v639_v42  ;;  %569 = vmatpush1.msra.mxu0 %v494_v47  ;;  %v546_v7 = vld [vmem:[#allocation8 + $0x1f0] sm:$0xff]  ;;  %v688_v8 = vld [vmem:[#allocation10 + $0x1c8] sm:$0xff]  ;;  %v687_v10 = vld [vmem:[#allocation10 + $0x1c0] sm:$0xff] }
  0xac   : > { %719 = vmatprep.subr.mxu1 %v638_v44  ;;  %570 = vmatprep.subr.mxu0 %v493_v49  ;;  %v545_v9 = vld [vmem:[#allocation8 + $0x1e8] sm:$0xff]  ;;  %v544_v11 = vld [vmem:[#allocation8 + $0x1e0] sm:$0xff]  ;;  %v686_v12 = vld [vmem:[#allocation10 + $0x1b8] sm:$0xff] }
  0xad   : > { %720 = vmatpush1.msra.mxu1 %v637_v46  ;;  %571 = vmatpush1.msra.mxu0 %v492_v51  ;;  %v543_v13 = vld [vmem:[#allocation8 + $0x1d8] sm:$0xff]  ;;  %v685_v14 = vld [vmem:[#allocation10 + $0x1b0] sm:$0xff]  ;;  %v684_v16 = vld [vmem:[#allocation10 + $0x1a8] sm:$0xff] }
  0xae   : > { %721 = vmatprep.subr.mxu1 %v636_v48  ;;  %572 = vmatprep.subr.mxu0 %v491_v53  ;;  %v542_v15 = vld [vmem:[#allocation8 + $0x1d0] sm:$0xff]  ;;  %v541_v17 = vld [vmem:[#allocation8 + $0x1c8] sm:$0xff]  ;;  %v683_v18 = vld [vmem:[#allocation10 + $0x1a0] sm:$0xff] }
  0xaf   : > { %722 = vmatpush1.msra.mxu1 %v635_v50  ;;  %573 = vmatpush1.msra.mxu0 %v490_v55  ;;  %v540_v19 = vld [vmem:[#allocation8 + $0x1c0] sm:$0xff]  ;;  %v682_v20 = vld [vmem:[#allocation10 + $0x198] sm:$0xff]  ;;  %v681_v22 = vld [vmem:[#allocation10 + $0x190] sm:$0xff] }
  0xb0   : > { %723 = vmatprep.subr.mxu1 %v634_v52  ;;  %574 = vmatprep.subr.mxu0 %v489_v57  ;;  %v539_v21 = vld [vmem:[#allocation8 + $0x1b8] sm:$0xff]  ;;  %v538_v23 = vld [vmem:[#allocation8 + $0x1b0] sm:$0xff]  ;;  %v680_v24 = vld [vmem:[#allocation10 + $0x188] sm:$0xff] }
  0xb1   : > { %724 = vmatpush1.msra.mxu1 %v633_v54  ;;  %575 = vmatpush1.msra.mxu0 %v488_v59  ;;  %v537_v25 = vld [vmem:[#allocation8 + $0x1a8] sm:$0xff]  ;;  %v679_v26 = vld [vmem:[#allocation10 + $0x180] sm:$0xff]  ;;  %v678_v28 = vld [vmem:[#allocation10 + $0x178] sm:$0xff] }
  0xb2   : > { %725 = vmatprep.subr.mxu1 %v632_v56  ;;  %576 = vmatprep.subr.mxu0 %v487_v61  ;;  %v536_v27 = vld [vmem:[#allocation8 + $0x1a0] sm:$0xff]  ;;  %v535_v29 = vld [vmem:[#allocation8 + $0x198] sm:$0xff]  ;;  %v677_v30 = vld [vmem:[#allocation10 + $0x170] sm:$0xff] }
  0xb3   : > { %726 = vmatpush1.msra.mxu1 %v631_v58  ;;  %577 = vmatpush1.msra.mxu0 %v486_v63  ;;  %v534_v31 = vld [vmem:[#allocation8 + $0x190] sm:$0xff]  ;;  %v676_v32 = vld [vmem:[#allocation10 + $0x168] sm:$0xff]  ;;  %v675_v34 = vld [vmem:[#allocation10 + $0x160] sm:$0xff] }
  0xb4   : > { %727 = vmatprep.subr.mxu1 %v694_v60  ;;  %578 = vmatprep.subr.mxu0 %v485_v1  ;;  %v533_v33 = vld [vmem:[#allocation8 + $0x188] sm:$0xff]  ;;  %v532_v35 = vld [vmem:[#allocation8 + $0x180] sm:$0xff]  ;;  %v674_v36 = vld [vmem:[#allocation10 + $0x158] sm:$0xff] }
  0xb5   : > { %728 = vmatpush2.msra.mxu1 %v693_v62  ;;  %579 = vmatpush1.msra.mxu0 %v484_v3  ;;  %v531_v37 = vld [vmem:[#allocation8 + $0x178] sm:$0xff]  ;;  %v673_v38 = vld [vmem:[#allocation10 + $0x150] sm:$0xff]  ;;  %v672_v40 = vld [vmem:[#allocation10 + $0x148] sm:$0xff] }
  0xb6   : > { %729 = vmatprep.subr.mxu1 %v692_v0  ;;  %580 = vmatprep.subr.mxu0 %v547_v5  ;;  %v530_v39 = vld [vmem:[#allocation8 + $0x170] sm:$0xff]  ;;  %v529_v41 = vld [vmem:[#allocation8 + $0x168] sm:$0xff]  ;;  %v671_v42 = vld [vmem:[#allocation10 + $0x140] sm:$0xff] }
  0xb7   : > { %730 = vmatpush2.msra.mxu1 %v691_v2  ;;  %581 = vmatpush2.msra.mxu0 %v546_v7  ;;  %v626_v43 = vld [vmem:[%s3588_s17 + $0x8] sm:$0xff]  ;;  %v528_v45 = vld [vmem:[#allocation8 + $0x160] sm:$0xff]  ;;  %v669_v46 = vld [vmem:[#allocation10 + $0x130] sm:$0xff] }
  0xb8   : > { %731 = vmatprep.subr.mxu1 %v690_v4  ;;  %582 = vmatprep.subr.mxu0 %v545_v9  ;;  %v670_v44 = vld [vmem:[#allocation10 + $0x138] sm:$0xff]  ;;  %v668_v48 = vld [vmem:[#allocation10 + $0x128] sm:$0xff]  ;;  %v526_v49 = vld [vmem:[#allocation8 + $0x150] sm:$0xff] }
  0xb9   : > { %732 = vmatpush2.msra.mxu1 %v689_v6  ;;  %583 = vmatpush2.msra.mxu0 %v544_v11  ;;  %v527_v47 = vld [vmem:[#allocation8 + $0x158] sm:$0xff]  ;;  %v667_v50 = vld [vmem:[#allocation10 + $0x120] sm:$0xff]  ;;  %v525_v51 = vld [vmem:[#allocation8 + $0x148] sm:$0xff] }
  0xba   : > { %733 = vmatprep.subr.mxu1 %v688_v8  ;;  %584 = vmatprep.subr.mxu0 %v543_v13  ;;  %v666_v52 = vld [vmem:[#allocation10 + $0x118] sm:$0xff]  ;;  %v524_v53 = vld [vmem:[#allocation8 + $0x140] sm:$0xff]  ;;  %v665_v54 = vld [vmem:[#allocation10 + $0x110] sm:$0xff] }
  0xbb   : > { %734 = vmatpush2.msra.mxu1 %v687_v10  ;;  %585 = vmatpush2.msra.mxu0 %v542_v15  ;;  %v523_v55 = vld [vmem:[#allocation8 + $0x138] sm:$0xff]  ;;  %v664_v56 = vld [vmem:[#allocation10 + $0x108] sm:$0xff]  ;;  %v522_v57 = vld [vmem:[#allocation8 + $0x130] sm:$0xff] }
  0xbc   : > { %735 = vmatprep.subr.mxu1 %v686_v12  ;;  %586 = vmatprep.subr.mxu0 %v541_v17  ;;  %v663_v58 = vld [vmem:[#allocation10 + $0x100] sm:$0xff]  ;;  %v521_v59 = vld [vmem:[#allocation8 + $0x128] sm:$0xff]  ;;  %v519_v63 = vld [vmem:[#allocation8 + $0x118] sm:$0xff] }
  0xbd   : > { %736 = vmatpush2.msra.mxu1 %v685_v14  ;;  %587 = vmatpush2.msra.mxu0 %v540_v19  ;;  %v625_v60 = vld [vmem:[%s3588_s17] sm:$0xff]  ;;  %v628_v62 = vld [vmem:[%s3588_s17 + $0x18] sm:$0xff]  ;;  %v627_v3 = vld [vmem:[%s3588_s17 + $0x10] sm:$0xff] }
  0xbe   : > { %737 = vmatprep.subr.mxu1 %v684_v16  ;;  %588 = vmatprep.subr.mxu0 %v539_v21  ;;  %v520_v61 = vld [vmem:[#allocation8 + $0x120] sm:$0xff]  ;;  %v518_v0 = vld [vmem:[#allocation8 + $0x110] sm:$0xff]  ;;  %v481_v1 = vld [vmem:[%s3580_s25 + $0x8] sm:$0xff] }
  0xbf   : > { %738 = vmatpush2.msra.mxu1 %v683_v18  ;;  %589 = vmatpush2.msra.mxu0 %v538_v23  ;;  %v517_v2 = vld [vmem:[#allocation8 + $0x108] sm:$0xff]  ;;  %v516_v4 = vld [vmem:[#allocation8 + $0x100] sm:$0xff]  ;;  %v483_v7 = vld [vmem:[%s3580_s25 + $0x18] sm:$0xff] }
  0xc0   : > { %739 = vmatprep.subr.mxu1 %v682_v20  ;;  %590 = vmatprep.subr.mxu0 %v537_v25  ;;  %v630_v5 = vld [vmem:[%s3588_s17 + $0x28] sm:$0xff]  ;;  %v480_v6 = vld [vmem:[%s3580_s25] sm:$0xff]  ;;  %v814_v9 = vld [vmem:[#allocation11 + $0xf0] sm:$0xff] }
  0xc1   : > { %740 = vmatpush2.msra.mxu1 %v681_v22  ;;  %591 = vmatpush2.msra.mxu0 %v536_v27  ;;  %v815_v8 = vld [vmem:[#allocation11 + $0xf8] sm:$0xff]  ;;  %v629_v10 = vld [vmem:[%s3588_s17 + $0x20] sm:$0xff]  ;;  %v813_v11 = vld [vmem:[#allocation11 + $0xe8] sm:$0xff] }
  0xc2   : > { %741 = vmatprep.subr.mxu1 %v680_v24  ;;  %592 = vmatprep.subr.mxu0 %v535_v29  ;;  %v482_v12 = vld [vmem:[%s3580_s25 + $0x10] sm:$0xff]  ;;  %v812_v13 = vld [vmem:[#allocation11 + $0xe0] sm:$0xff]  ;;  %v811_v14 = vld [vmem:[#allocation11 + $0xd8] sm:$0xff] }
  0xc3   : > { %742 = vmatpush2.msra.mxu1 %v679_v26  ;;  %593 = vmatpush2.msra.mxu0 %v534_v31  ;;  %v810_v15 = vld [vmem:[#allocation11 + $0xd0] sm:$0xff]  ;;  %v809_v16 = vld [vmem:[#allocation11 + $0xc8] sm:$0xff]  ;;  %v808_v17 = vld [vmem:[#allocation11 + $0xc0] sm:$0xff] }
  0xc4   : > { %743 = vmatprep.subr.mxu1 %v678_v28  ;;  %594 = vmatprep.subr.mxu0 %v533_v33  ;;  %v807_v18 = vld [vmem:[#allocation11 + $0xb8] sm:$0xff]  ;;  %v806_v19 = vld [vmem:[#allocation11 + $0xb0] sm:$0xff]  ;;  %v805_v20 = vld [vmem:[#allocation11 + $0xa8] sm:$0xff] }
  0xc5   : > { %744 = vmatpush2.msra.mxu1 %v677_v30  ;;  %595 = vmatpush2.msra.mxu0 %v532_v35  ;;  %v804_v21 = vld [vmem:[#allocation11 + $0xa0] sm:$0xff]  ;;  %v803_v22 = vld [vmem:[#allocation11 + $0x98] sm:$0xff]  ;;  %v802_v23 = vld [vmem:[#allocation11 + $0x90] sm:$0xff] }
  0xc6   : > { %745 = vmatprep.subr.mxu1 %v676_v32  ;;  %596 = vmatprep.subr.mxu0 %v531_v37  ;;  %v801_v24 = vld [vmem:[#allocation11 + $0x88] sm:$0xff]  ;;  %v800_v25 = vld [vmem:[#allocation11 + $0x80] sm:$0xff]  ;;  %v799_v26 = vld [vmem:[#allocation11 + $0x78] sm:$0xff] }
  0xc7   : > { %746 = vmatpush2.msra.mxu1 %v675_v34  ;;  %597 = vmatpush2.msra.mxu0 %v530_v39  ;;  %v798_v27 = vld [vmem:[#allocation11 + $0x70] sm:$0xff]  ;;  %v797_v28 = vld [vmem:[#allocation11 + $0x68] sm:$0xff]  ;;  %v796_v29 = vld [vmem:[#allocation11 + $0x60] sm:$0xff] }
  0xc8   : > { %747 = vmatprep.subr.mxu1 %v674_v36  ;;  %598 = vmatprep.subr.mxu0 %v529_v41  ;;  %v795_v30 = vld [vmem:[#allocation11 + $0x58] sm:$0xff]  ;;  %v794_v31 = vld [vmem:[#allocation11 + $0x50] sm:$0xff]  ;;  %v793_v32 = vld [vmem:[#allocation11 + $0x48] sm:$0xff] }
  0xc9   : > { %748 = vmatpush2.msra.mxu1 %v673_v38  ;;  %759 = vmatprep.mubr.f32.mxu1 %v626_v43  ;;  %v792_v33 = vld [vmem:[#allocation11 + $0x40] sm:$0xff]  ;;  %v791_v34 = vld [vmem:[#allocation11 + $0x38] sm:$0xff]  ;;  %v790_v35 = vld [vmem:[#allocation11 + $0x30] sm:$0xff] }
  0xca   : > { %749 = vmatprep.subr.mxu1 %v672_v40  ;;  %599 = vmatpush2.msra.mxu0 %v528_v45  ;;  %v789_v36 = vld [vmem:[#allocation11 + $0x28] sm:$0xff]  ;;  %v788_v37 = vld [vmem:[#allocation11 + $0x20] sm:$0xff]  ;;  %v787_v38 = vld [vmem:[#allocation11 + $0x18] sm:$0xff] }
  0xcb   : > { %750 = vmatpush2.msra.mxu1 %v671_v42  ;;  %600 = vmatprep.subr.mxu0 %v527_v47  ;;  %v786_v39 = vld [vmem:[#allocation11 + $0x10] sm:$0xff]  ;;  %v785_v40 = vld [vmem:[#allocation11 + $0x8] sm:$0xff]  ;;  %v784_v41 = vld [vmem:[#allocation11] sm:$0xff] }
  0xcc   : > { %751 = vmatprep.subr.mxu1 %v670_v44  ;;  %601 = vmatpush2.msra.mxu0 %v526_v49  ;;  %v847_v42 = vld [vmem:[#allocation11 + $0x1f8] sm:$0xff]  ;;  %v846_v43 = vld [vmem:[#allocation11 + $0x1f0] sm:$0xff]  ;;  %v845_v44 = vld [vmem:[#allocation11 + $0x1e8] sm:$0xff] }
  0xcd   : > { %752 = vmatpush2.msra.mxu1 %v669_v46  ;;  %602 = vmatprep.subr.mxu0 %v525_v51  ;;  %v844_v45 = vld [vmem:[#allocation11 + $0x1e0] sm:$0xff]  ;;  %v843_v46 = vld [vmem:[#allocation11 + $0x1d8] sm:$0xff]  ;;  %v842_v47 = vld [vmem:[#allocation11 + $0x1d0] sm:$0xff] }
  0xce   : > { %753 = vmatprep.subr.mxu1 %v668_v48  ;;  %603 = vmatpush2.msra.mxu0 %v524_v53  ;;  %v841_v48 = vld [vmem:[#allocation11 + $0x1c8] sm:$0xff]  ;;  %v840_v49 = vld [vmem:[#allocation11 + $0x1c0] sm:$0xff]  ;;  %v838_v51 = vld [vmem:[#allocation11 + $0x1b0] sm:$0xff] }
  0xcf   : > { %754 = vmatpush2.msra.mxu1 %v667_v50  ;;  %604 = vmatprep.subr.mxu0 %v523_v55  ;;  %v839_v50 = vld [vmem:[#allocation11 + $0x1b8] sm:$0xff]  ;;  %v836_v53 = vld [vmem:[#allocation11 + $0x1a0] sm:$0xff]  ;;  %v834_v55 = vld [vmem:[#allocation11 + $0x190] sm:$0xff] }
  0xd0   : > { %755 = vmatprep.subr.mxu1 %v666_v52  ;;  %605 = vmatpush2.msra.mxu0 %v522_v57  ;;  %v837_v52 = vld [vmem:[#allocation11 + $0x1a8] sm:$0xff]  ;;  %v832_v57 = vld [vmem:[#allocation11 + $0x180] sm:$0xff] }
  0xd1   : > { %756 = vmatpush2.msra.mxu1 %v665_v54  ;;  %606 = vmatprep.subr.mxu0 %v521_v59  ;;  %v835_v54 = vld [vmem:[#allocation11 + $0x198] sm:$0xff]  ;;  %v830_v59 = vld [vmem:[#allocation11 + $0x170] sm:$0xff] }
  0xd2   : > { %757 = vmatprep.subr.mxu1 %v664_v56  ;;  %607 = vmatpush2.msra.mxu0 %v520_v61  ;;  %v833_v56 = vld [vmem:[#allocation11 + $0x188] sm:$0xff]  ;;  %v828_v61 = vld [vmem:[#allocation11 + $0x160] sm:$0xff] }
  0xd3   : > { %758 = vmatpush2.msra.mxu1 %v663_v58  ;;  %608 = vmatprep.subr.mxu0 %v519_v63  ;;  %v831_v58 = vld [vmem:[#allocation11 + $0x178] sm:$0xff]  ;;  %v826_v63 = vld [vmem:[#allocation11 + $0x150] sm:$0xff] }
  0xd4   : > { %760 = vmatmul.mubr.f32.vlgmr.msra.gmra.mxu1 %v625_v60  ;;  %609 = vmatpush2.msra.mxu0 %v518_v0  ;;  %v829_v60 = vld [vmem:[#allocation11 + $0x168] sm:$0xff] }
  0xd5   : > { %765 = vmatprep.mubr.f32.mxu1 %v628_v62  ;;  %612 = vmatprep.mubr.f32.mxu0 %v481_v1  ;;  %v827_v62 = vld [vmem:[#allocation11 + $0x158] sm:$0xff]  ;;  %v825_v0 = vld [vmem:[#allocation11 + $0x148] sm:$0xff]  ;;  %v824_v1 = vld [vmem:[#allocation11 + $0x140] sm:$0xff] }
  0xd6   : > { %610 = vmatprep.subr.mxu0 %v517_v2  ;;  %v823_v2 = vld [vmem:[#allocation11 + $0x138] sm:$0xff] }
  0xd7   : > { %611 = vmatpush2.msra.mxu0 %v516_v4  ;;  %v821_v4 = vld [vmem:[#allocation11 + $0x128] sm:$0xff] }
  0xd8   : > { %766 = vmatmul.mubr.f32.gmra.mxu1 %v627_v3  ;;  %613 = vmatmul.mubr.f32.vlgmr.msra.gmra.mxu0 %v480_v6  ;;  %v822_v3 = vld [vmem:[#allocation11 + $0x130] sm:$0xff]  ;;  %v819_v6 = vld [vmem:[#allocation11 + $0x118] sm:$0xff] }
  0xd9   : > { %771 = vmatprep.mubr.f32.mxu1 %v630_v5  ;;  %618 = vmatprep.mubr.f32.mxu0 %v483_v7  ;;  %v820_v5 = vld [vmem:[#allocation11 + $0x120] sm:$0xff]  ;;  %v818_v7 = vld [vmem:[#allocation11 + $0x110] sm:$0xff] }
  0xda   : > { %848 = vmatprep.subr.mxu0 %v815_v8  ;;  %v817_v8 = vld [vmem:[#allocation11 + $0x108] sm:$0xff] }
  0xdb   : > { %849 = vmatpush1.msra.mxu0 %v814_v9  ;;  %v816_v9 = vld [vmem:[#allocation11 + $0x100] sm:$0xff] }
  0xdc   : > { %772 = vmatmul.mubr.f32.gmra.mxu1 %v629_v10  ;;  %850 = vmatprep.subr.mxu0 %v813_v11  ;;  %v779_v10 = vld [vmem:[%s3594_s18 + $0x8] sm:$0xff]  ;;  %v778_v11 = vld [vmem:[%s3594_s18] sm:$0xff] }
  0xdd   : > { %619 = vmatmul.mubr.f32.gmra.mxu0 %v482_v12  ;;  %v781_v12 = vld [vmem:[%s3594_s18 + $0x18] sm:$0xff] }
  0xde   : > { %851 = vmatpush1.msra.mxu0 %v812_v13  ;;  %912 = vmatprep.mubr.f32.mxu0 %v779_v10  ;;  %v780_v13 = vld [vmem:[%s3594_s18 + $0x10] sm:$0xff] }
  0xdf   : > { %852 = vmatprep.subr.mxu0 %v811_v14  ;;  %v783_v14 = vld [vmem:[%s3594_s18 + $0x28] sm:$0xff] }
  0xe0   : > { %853 = vmatpush1.msra.mxu0 %v810_v15  ;;  %v782_v15 = vld [vmem:[%s3594_s18 + $0x20] sm:$0xff] }
  0xe1   : > { %854 = vmatprep.subr.mxu0 %v809_v16  ;;  %v3329_v16 = vmov 1983009808  }
  0xe2   : > { %855 = vmatpush1.msra.mxu0 %v808_v17  ;;  %v933_v17 = vunpack.c.l.s4 %v3329_v16 }
  0xe3   : > { %856 = vmatprep.subr.mxu0 %v807_v18  ;;  %v935_v18 = vlaneseq }
  0xe4   : > { %857 = vmatpush1.msra.mxu0 %v806_v19  ;;  %v934_v19 = vunpack.c.0.s8 %v933_v17 }
  0xe5   : > { %858 = vmatprep.subr.mxu0 %v805_v20  ;;  %v3620_v20 = vshrl.u32 %v935_v18, 7 }
  0xe6   : > { %859 = vmatpush1.msra.mxu0 %v804_v21  ;;  %v3330_v21 = vmov 1934713408  }
  0xe7   : > { %860 = vmatprep.subr.mxu0 %v803_v22  ;;  %v964_v22 = vunpack.c.l.s4 %v3330_v21 }
  0xe8   : > { %861 = vmatpush1.msra.mxu0 %v802_v23  ;;  %v3623_v23 = vsub.s32 %v934_v19, %v3620_v20 }
  0xe9   : > { %862 = vmatprep.subr.mxu0 %v801_v24  ;;  %v965_v24 = vunpack.c.0.s8 %v964_v22 }
  0xea   : > { %863 = vmatpush1.msra.mxu0 %v800_v25 }
  0xeb   : > { %864 = vmatprep.subr.mxu0 %v799_v26  ;;  %v3331_v26 = vmov 0.0  }
  0xec   : > { %865 = vmatpush1.msra.mxu0 %v798_v27 }
  0xed   : > { %866 = vmatprep.subr.mxu0 %v797_v28 }
  0xee   : > { %867 = vmatpush1.msra.mxu0 %v796_v29 }
  0xef   : > { %868 = vmatprep.subr.mxu0 %v795_v30  ;;  %v3628_v30 = vsub.s32 %v965_v24, %v3620_v20 }
  0xf0   : > { %869 = vmatpush1.msra.mxu0 %v794_v31 }
  0xf1   : > { %870 = vmatprep.subr.mxu0 %v793_v32 }
  0xf2   : > { %871 = vmatpush1.msra.mxu0 %v792_v33 }
  0xf3   : > { %872 = vmatprep.subr.mxu0 %v791_v34 }
  0xf4   : > { %873 = vmatpush1.msra.mxu0 %v790_v35 }
  0xf5   : > { %874 = vmatprep.subr.mxu0 %v789_v36 }
  0xf6   : > { %875 = vmatpush1.msra.mxu0 %v788_v37 }
  0xf7   : > { %876 = vmatprep.subr.mxu0 %v787_v38 }
  0xf8   : > { %877 = vmatpush1.msra.mxu0 %v786_v39 }
  0xf9   : > { %878 = vmatprep.subr.mxu0 %v785_v40 }
  0xfa   : > { %879 = vmatpush1.msra.mxu0 %v784_v41 }
  0xfb   : > { %880 = vmatprep.subr.mxu0 %v847_v42 }
  0xfc   : > { %881 = vmatpush2.msra.mxu0 %v846_v43 }
  0xfd   : > { %882 = vmatprep.subr.mxu0 %v845_v44 }
  0xfe   : > { %883 = vmatpush2.msra.mxu0 %v844_v45 }
  0xff   : > { %884 = vmatprep.subr.mxu0 %v843_v46 }
 0x100   : > { %885 = vmatpush2.msra.mxu0 %v842_v47 }
 0x101   : > { %886 = vmatprep.subr.mxu0 %v841_v48 }
 0x102   : > { %887 = vmatpush2.msra.mxu0 %v840_v49 }
 0x103   : > { %888 = vmatprep.subr.mxu0 %v839_v50 }
 0x104   : > { %889 = vmatpush2.msra.mxu0 %v838_v51 }
 0x105   : > { %890 = vmatprep.subr.mxu0 %v837_v52 }
 0x106   : > { %891 = vmatpush2.msra.mxu0 %v836_v53 }
 0x107   : > { %892 = vmatprep.subr.mxu0 %v835_v54 }
 0x108   : > { %893 = vmatpush2.msra.mxu0 %v834_v55 }
 0x109   : > { %894 = vmatprep.subr.mxu0 %v833_v56 }
 0x10a   : > { %895 = vmatpush2.msra.mxu0 %v832_v57 }
 0x10b   : > { %896 = vmatprep.subr.mxu0 %v831_v58 }
 0x10c   : > { %897 = vmatpush2.msra.mxu0 %v830_v59 }
 0x10d   : > { %898 = vmatprep.subr.mxu0 %v829_v60 }
 0x10e   : > { %899 = vmatpush2.msra.mxu0 %v828_v61 }
 0x10f   : > { %900 = vmatprep.subr.mxu0 %v827_v62 }
 0x110   : > { %901 = vmatpush2.msra.mxu0 %v826_v63 }
 0x111   : > { %902 = vmatprep.subr.mxu0 %v825_v0 }
 0x112   : > { %903 = vmatpush2.msra.mxu0 %v824_v1 }
 0x113   : > { %904 = vmatprep.subr.mxu0 %v823_v2 }
 0x114   : > { %905 = vmatpush2.msra.mxu0 %v822_v3 }
 0x115   : > { %906 = vmatprep.subr.mxu0 %v821_v4 }
 0x116   : > { %907 = vmatpush2.msra.mxu0 %v820_v5 }
 0x117   : > { %908 = vmatprep.subr.mxu0 %v819_v6 }
 0x118   : > { %909 = vmatpush2.msra.mxu0 %v818_v7 }
 0x119   : > { %910 = vmatprep.subr.mxu0 %v817_v8 }
 0x11a   : > { %911 = vmatpush2.msra.mxu0 %v816_v9 }
 0x11b   : > { %913 = vmatmul.mubr.f32.vlgmr.msra.gmra.mxu0 %v778_v11 }
 0x11c   : > { %918 = vmatprep.mubr.f32.mxu0 %v781_v12 }
 0x11f   : > { %919 = vmatmul.mubr.f32.gmra.mxu0 %v780_v13 }
 0x120   : > { %924 = vmatprep.mubr.f32.mxu0 %v783_v14 }
 0x123   : > { %925 = vmatmul.mubr.f32.gmra.mxu0 %v782_v15 }
 0x194   : > { %v761_v25 = vpop.f32.mrf.mxu1 }
 0x195   : > { %v1163_v27 = vcombine.high %v761_v25, %v3331_v26  ;;  %v1170_v29 = vrot.slane %v761_v25, %v3623_v23 }
 0x196   : > { %v763_v28 = vpop.f32.mrf.mxu1 }
 0x197   : > { %v1178_v31 = vcombine.high %v763_v28, %v3331_v26  ;;  %v1185_v32 = vrot.slane %v763_v28, %v3623_v23  ;;  %v1177_v33 = vrot.slane %v1163_v27, %v3623_v23 }
 0x198   : > { %v767_v34 = vpop.f32.mrf.mxu1  ;;  %v614_v39 = vpop.f32.mrf.mxu0 }
 0x199   : > { %v1192_v35 = vrot.slane %v1178_v31, %v3623_v23  ;;  %v1193_v36 = vcombine.low %v1170_v29, %v1185_v32  ;;  %v1194_v37 = vcombine.high %v1170_v29, %v1185_v32  ;;  %v1229_v38 = vcombine.high %v767_v34, %v3331_v26 }
 0x19a   : > { %v1236_v40 = vrot.slane %v767_v34, %v3623_v23  ;;  %v769_v41 = vpop.f32.mrf.mxu1  ;;  %v931_v42 = vcombine.high %v614_v39, %v3331_v26  ;;  %v938_v51 = vrot.slane %v614_v39, %v3623_v23  ;;  %v616_v5 = vpop.f32.mrf.mxu0 }
 0x19b   : > { %v1201_v43 = vrot.slane %v1193_v36, %v3628_v30  ;;  %v1208_v44 = vrot.slane %v1194_v37, %v3628_v30  ;;  %v1209_v45 = vcombine.low %v1177_v33, %v1192_v35  ;;  %v1210_v46 = vcombine.high %v1177_v33, %v1192_v35 }
 0x19c   : > { %v1243_v47 = vrot.slane %v1229_v38, %v3623_v23  ;;  %v1244_v48 = vcombine.high %v769_v41, %v3331_v26  ;;  %v1251_v49 = vrot.slane %v769_v41, %v3623_v23  ;;  %v773_v50 = vpop.f32.mrf.mxu1  ;;  %v945_v0 = vrot.slane %v931_v42, %v3623_v23 }
 0x19d   : > { %v3644_v52 = vrot.slane %v1209_v45, %v3628_v30  ;;  %v3647_v53 = vrot.slane %v1210_v46, %v3628_v30  ;;  %v1361_v54 = vcombine.low %v1201_v43, %v1208_v44  ;;  %v2814_v55 = vcombine.high %v1201_v43, %v1208_v44  ;;  %v620_v24 = vpop.f32.mrf.mxu0 }
 0x19e   : > { %v1258_v56 = vrot.slane %v1244_v48, %v3623_v23  ;;  %v1259_v57 = vcombine.low %v1236_v40, %v1251_v49  ;;  %v1260_v58 = vcombine.high %v1236_v40, %v1251_v49  ;;  %v1295_v59 = vcombine.high %v773_v50, %v3331_v26  ;;  %v775_v60 = vpop.f32.mrf.mxu1 }
 0x19f   : > { %v3652_v61 = vrot.slane %v1361_v54, %v3623_v23  ;;  %v3655_v62 = vrot.slane %v2814_v55, %v3623_v23  ;;  %v1377_v63 = vcombine.low %v3644_v52, %v3647_v53  ;;  %v1302_v6 = vrot.slane %v773_v50, %v3623_v23  ;;  %v622_v43 = vpop.f32.mrf.mxu0 }
 0x1a0   : > { %v1267_v1 = vrot.slane %v1259_v57, %v3628_v30  ;;  %v1274_v2 = vrot.slane %v1260_v58, %v3628_v30  ;;  %v1275_v3 = vcombine.low %v1243_v47, %v1258_v56  ;;  %v1276_v4 = vcombine.high %v1243_v47, %v1258_v56 }
 0x1a1   : > { %v1309_v7 = vrot.slane %v1295_v59, %v3623_v23  ;;  %v1310_v8 = vcombine.high %v775_v60, %v3331_v26  ;;  %v1317_v9 = vrot.slane %v775_v60, %v3623_v23  ;;  %v946_v17 = vcombine.high %v616_v5, %v3331_v26 }
 0x1a2   : > { %v1283_v10 = vrot.slane %v1275_v3, %v3628_v30  ;;  %v1290_v11 = vrot.slane %v1276_v4, %v3628_v30  ;;  %v1411_v12 = vcombine.low %v1267_v1, %v1274_v2  ;;  %v2816_v13 = vcombine.high %v1267_v1, %v1274_v2 }
 0x1a3   : > { %v1324_v14 = vrot.slane %v1310_v8, %v3623_v23  ;;  %v1325_v15 = vcombine.low %v1302_v6, %v1317_v9  ;;  %v1326_v16 = vcombine.high %v1302_v6, %v1317_v9  ;;  %v2815_v18 = vcombine.high %v3644_v52, %v3647_v53 }
 0x1a4   : > { %v3673_v19 = vrot.slane %v1411_v12, %v3623_v23  ;;  %v3676_v21 = vrot.slane %v2816_v13, %v3623_v23  ;;  %v1427_v22 = vcombine.low %v1283_v10, %v1290_v11  ;;  %v953_v31 = vrot.slane %v616_v5, %v3623_v23 }
 0x1a5   : > { %v1333_v25 = vrot.slane %v1325_v15, %v3628_v30  ;;  %v1340_v27 = vrot.slane %v1326_v16, %v3628_v30  ;;  %v1341_v28 = vcombine.low %v1309_v7, %v1324_v14  ;;  %v1342_v29 = vcombine.high %v1309_v7, %v1324_v14 }
 0x1a6   : > { %v960_v32 = vrot.slane %v946_v17, %v3623_v23  ;;  %v997_v33 = vcombine.high %v620_v24, %v3331_v26  ;;  %v1004_v34 = vrot.slane %v620_v24, %v3623_v23  ;;  %v961_v39 = vcombine.low %v938_v51, %v953_v31 }
 0x1a7   : > { %v1349_v35 = vrot.slane %v1341_v28, %v3628_v30  ;;  %v1356_v36 = vrot.slane %v1342_v29, %v3628_v30  ;;  %v1461_v37 = vcombine.low %v1333_v25, %v1340_v27  ;;  %v2818_v38 = vcombine.high %v1333_v25, %v1340_v27 }
 0x1a8   : > { %v962_v40 = vcombine.high %v938_v51, %v953_v31  ;;  %v977_v41 = vcombine.low %v945_v0, %v960_v32  ;;  %v978_v42 = vcombine.high %v945_v0, %v960_v32  ;;  %v969_v48 = vrot.slane %v961_v39, %v3628_v30 }
 0x1a9   : > { %v1468_v44 = vrot.slane %v1461_v37, %v3623_v23  ;;  %v1476_v45 = vrot.slane %v2818_v38, %v3623_v23  ;;  %v1477_v46 = vcombine.low %v1349_v35, %v1356_v36  ;;  %v2819_v47 = vcombine.high %v1349_v35, %v1356_v36 }
 0x1aa   : > { %v976_v49 = vrot.slane %v962_v40, %v3628_v30  ;;  %v985_v50 = vrot.slane %v977_v41, %v3628_v30  ;;  %v992_v54 = vrot.slane %v978_v42, %v3628_v30  ;;  %v2817_v55 = vcombine.high %v1283_v10, %v1290_v11 }
 0x1ab   : > { %v1011_v51 = vrot.slane %v997_v33, %v3623_v23  ;;  %v1012_v56 = vcombine.high %v622_v43, %v3331_v26  ;;  %v1019_v57 = vrot.slane %v622_v43, %v3623_v23  ;;  %v1484_v0 = vrot.slane %v1477_v46, %v3623_v23 }
 0x1ac   : > { %v1063_v58 = vcombine.low %v969_v48, %v976_v49  ;;  %v2810_v59 = vcombine.high %v969_v48, %v976_v49  ;;  %v1079_v60 = vcombine.low %v985_v50, %v992_v54  ;;  %v1492_v4 = vrot.slane %v2819_v47, %v3623_v23 }
 0x1ad   : > { %v1026_v1 = vrot.slane %v1012_v56, %v3623_v23  ;;  %v1027_v2 = vcombine.low %v1004_v34, %v1019_v57  ;;  %v1028_v3 = vcombine.high %v1004_v34, %v1019_v57  ;;  %v2811_v6 = vcombine.high %v985_v50, %v992_v54 }
 0x1ae   : > { %v1070_v5 = vrot.slane %v1063_v58, %v3623_v23  ;;  %v1493_v7 = vcombine.low %v1468_v44, %v1476_v45  ;;  %v1434_v8 = vrot.slane %v1427_v22, %v3623_v23  ;;  %v1078_v13 = vrot.slane %v2810_v59, %v3623_v23 }
 0x1af   : > { %v1035_v9 = vrot.slane %v1027_v2, %v3628_v30  ;;  %v1042_v10 = vrot.slane %v1028_v3, %v3628_v30  ;;  %v1043_v11 = vcombine.low %v1011_v51, %v1026_v1  ;;  %v1044_v12 = vcombine.high %v1011_v51, %v1026_v1 }
 0x1b0   : > { %v1501_v14 = vcombine.low %v1484_v0, %v1492_v4  ;;  %v1442_v15 = vrot.slane %v2817_v55, %v3623_v23  ;;  %v1443_v16 = vcombine.low %v3673_v19, %v3676_v21  ;;  %v1500_v27 = vrot.slane %v1493_v7, %v3628_v30 }
 0x1b1   : > { %v1051_v17 = vrot.slane %v1043_v11, %v3628_v30  ;;  %v1058_v24 = vrot.slane %v1044_v12, %v3628_v30  ;;  %v1113_v25 = vcombine.low %v1035_v9, %v1042_v10  ;;  %v2812_v22 = vcombine.high %v1035_v9, %v1042_v10 }
 0x1b2   : > { %v1508_v28 = vrot.slane %v1501_v14, %v3628_v30  ;;  %v1451_v29 = vcombine.low %v1434_v8, %v1442_v15  ;;  %v1086_v31 = vrot.slane %v1079_v60, %v3623_v23  ;;  %v1450_v35 = vrot.slane %v1443_v16, %v3628_v30 }
 0x1b3   : > { %v1120_v32 = vrot.slane %v1113_v25, %v3623_v23  ;;  %v1129_v33 = vcombine.low %v1051_v17, %v1058_v24  ;;  %v2813_v34 = vcombine.high %v1051_v17, %v1058_v24  ;;  %v1094_v37 = vrot.slane %v2811_v6, %v3623_v23 }
 0x1b4   : > { %v1509_v19 = vcombine.low %v1500_v27, %v1508_v28  ;;  %v1510_v21 = vcombine.high %v1500_v27, %v1508_v28  ;;  %v1458_v36 = vrot.slane %v1451_v29, %v3628_v30  ;;  %v1128_v38 = vrot.slane %v2812_v22, %v3623_v23 }
 0x1b5   : > { %v1136_v39 = vrot.slane %v1129_v33, %v3623_v23  ;;  %v1144_v40 = vrot.slane %v2813_v34, %v3623_v23  ;;  %v1095_v41 = vcombine.low %v1070_v5, %v1078_v13  ;;  %v1103_v44 = vcombine.low %v1086_v31, %v1094_v37 }
 0x1b6   : > { %2861 = vmatprep.subr.mxu0 %v1509_v19  ;;  %2870 = vmatprep.subr.mxu1 %v1510_v21  ;;  %v1459_v42 = vcombine.low %v1450_v35, %v1458_v36  ;;  %v1460_v43 = vcombine.high %v1450_v35, %v1458_v36  ;;  %v1384_v47 = vrot.slane %v1377_v63, %v3623_v23 }
 0x1b7   : > { %2862 = vmatpush3.xpose.msra.mxu0 %v1509_v19  ;;  %2871 = vmatpush3.xpose.msra.mxu1 %v1510_v21  ;;  %v1102_v45 = vrot.slane %v1095_v41, %v3628_v30  ;;  %v1110_v46 = vrot.slane %v1103_v44, %v3628_v30  ;;  %v1392_v48 = vrot.slane %v2815_v18, %v3623_v23 }
 0x1b8   : > { %2863 = vmatprep.subr.mxu0 %v1459_v42  ;;  %2872 = vmatprep.subr.mxu1 %v1460_v43  ;;  %v1145_v49 = vcombine.low %v1120_v32, %v1128_v38  ;;  %v1393_v50 = vcombine.low %v3652_v61, %v3655_v62  ;;  %v1153_v54 = vcombine.low %v1136_v39, %v1144_v40 }
 0x1b9   : > { %v1111_v55 = vcombine.low %v1102_v45, %v1110_v46  ;;  %v1112_v51 = vcombine.high %v1102_v45, %v1110_v46  ;;  %v1401_v56 = vcombine.low %v1384_v47, %v1392_v48 }
 0x1ba   : > { %v1400_v57 = vrot.slane %v1393_v50, %v3628_v30  ;;  %v1152_v58 = vrot.slane %v1145_v49, %v3628_v30  ;;  %v1160_v18 = vrot.slane %v1153_v54, %v3628_v30 }
 0x1bb   : > { %2864 = vmatpush3.xpose.msra.mxu0 %v1459_v42  ;;  %2873 = vmatpush3.xpose.msra.mxu1 %v1460_v43  ;;  %v1408_v63 = vrot.slane %v1401_v56, %v3628_v30 }
 0x1bc   : > { %2867 = vmatprep.mubr.f32.mxu0 %v1111_v55  ;;  %2876 = vmatprep.mubr.f32.mxu1 %v1112_v51  ;;  %v1161_v61 = vcombine.low %v1152_v58, %v1160_v18  ;;  %v1162_v62 = vcombine.high %v1152_v58, %v1160_v18 }
 0x1bd   : > { %v1409_v52 = vcombine.low %v1400_v57, %v1408_v63  ;;  %v1410_v53 = vcombine.high %v1400_v57, %v1408_v63 }
 0x1bf   : > { %2865 = vmatprep.subr.mxu0 %v1409_v52  ;;  %2874 = vmatprep.subr.mxu1 %v1410_v53 }
 0x1c0   : > { %2866 = vmatpush3.xpose.msra.mxu0 %v1409_v52  ;;  %2875 = vmatpush3.xpose.msra.mxu1 %v1410_v53 }
 0x1c3   : > { %2868 = vmatmul.mubr.f32.vlgmr.msra.gmra.mxu0 %v1161_v61  ;;  %2877 = vmatmul.mubr.f32.vlgmr.msra.gmra.mxu1 %v1162_v62 }
 0x1db   : > { %v914_v59 = vpop.f32.mrf.mxu0 }
 0x1dc   : > { %v1518_v8 = vrot.slane %v914_v59, %v3623_v23  ;;  %v1511_v12 = vcombine.high %v914_v59, %v3331_v26 }
 0x1dd   : > { %v916_v60 = vpop.f32.mrf.mxu0 }
 0x1de   : > { %v1533_v9 = vrot.slane %v916_v60, %v3623_v23  ;;  %v1526_v13 = vcombine.high %v916_v60, %v3331_v26  ;;  %v1525_v31 = vrot.slane %v1511_v12, %v3623_v23 }
 0x1df   : > { %v920_v0 = vpop.f32.mrf.mxu0 }
 0x1e0   : > { %v1577_v10 = vcombine.high %v920_v0, %v3331_v26  ;;  %v1584_v14 = vrot.slane %v920_v0, %v3623_v23  ;;  %v1541_v22 = vcombine.low %v1518_v8, %v1533_v9  ;;  %v1542_v27 = vcombine.high %v1518_v8, %v1533_v9 }
 0x1e1   : > { %v922_v1 = vpop.f32.mrf.mxu0  ;;  %v1540_v32 = vrot.slane %v1526_v13, %v3623_v23 }
 0x1e2   : > { %v1592_v11 = vcombine.high %v922_v1, %v3331_v26  ;;  %v1599_v15 = vrot.slane %v922_v1, %v3623_v23  ;;  %v1591_v28 = vrot.slane %v1577_v10, %v3623_v23  ;;  %v1549_v37 = vrot.slane %v1541_v22, %v3628_v30 }
 0x1e3   : > { %v926_v2 = vpop.f32.mrf.mxu0  ;;  %v1556_v38 = vrot.slane %v1542_v27, %v3628_v30  ;;  %v1557_v41 = vcombine.low %v1525_v31, %v1540_v32  ;;  %v1558_v42 = vcombine.high %v1525_v31, %v1540_v32 }
 0x1e4   : > { %v1643_v4 = vcombine.high %v926_v2, %v3331_v26  ;;  %v1650_v5 = vrot.slane %v926_v2, %v3623_v23  ;;  %v1606_v29 = vrot.slane %v1592_v11, %v3623_v23  ;;  %v1607_v33 = vcombine.low %v1584_v14, %v1599_v15 }
 0x1e5   : > { %v928_v3 = vpop.f32.mrf.mxu0  ;;  %v1608_v34 = vcombine.high %v1584_v14, %v1599_v15  ;;  %v1709_v49 = vcombine.low %v1549_v37, %v1556_v38  ;;  %v2820_v50 = vcombine.high %v1549_v37, %v1556_v38  ;;  %v1565_v51 = vrot.slane %v1557_v41, %v3628_v30 }
 0x1e6   : > { %v1658_v6 = vcombine.high %v928_v3, %v3331_v26  ;;  %v1665_v7 = vrot.slane %v928_v3, %v3623_v23  ;;  %v1657_v16 = vrot.slane %v1643_v4, %v3623_v23  ;;  %v1623_v39 = vcombine.low %v1591_v28, %v1606_v29 }
 0x1e7   : > { %v1624_v40 = vcombine.high %v1591_v28, %v1606_v29  ;;  %v1615_v43 = vrot.slane %v1607_v33, %v3628_v30  ;;  %v1622_v44 = vrot.slane %v1608_v34, %v3628_v30  ;;  %v1572_v56 = vrot.slane %v1558_v42, %v3628_v30 }
 0x1e8   : > { %v1672_v17 = vrot.slane %v1658_v6, %v3623_v23  ;;  %v1673_v24 = vcombine.low %v1650_v5, %v1665_v7  ;;  %v1674_v25 = vcombine.high %v1650_v5, %v1665_v7  ;;  %v1631_v54 = vrot.slane %v1623_v39, %v3628_v30 }
 0x1e9   : > { %v1638_v55 = vrot.slane %v1624_v40, %v3628_v30  ;;  %v1759_v57 = vcombine.low %v1615_v43, %v1622_v44  ;;  %v2822_v63 = vcombine.high %v1615_v43, %v1622_v44  ;;  %v1716_v61 = vrot.slane %v1709_v49, %v3623_v23 }
 0x1ea   : > { %v1681_v35 = vrot.slane %v1673_v24, %v3628_v30  ;;  %v1688_v19 = vrot.slane %v1674_v25, %v3628_v30  ;;  %v1689_v21 = vcombine.low %v1657_v16, %v1672_v17  ;;  %v1690_v36 = vcombine.high %v1657_v16, %v1672_v17 }
 0x1eb   : > { %v1724_v62 = vrot.slane %v2820_v50, %v3623_v23  ;;  %v1775_v59 = vcombine.low %v1631_v54, %v1638_v55  ;;  %v1725_v60 = vcombine.low %v1565_v51, %v1572_v56  ;;  %v1766_v0 = vrot.slane %v1759_v57, %v3623_v23 }
 0x1ec   : > { %v1697_v45 = vrot.slane %v1689_v21, %v3628_v30  ;;  %v1704_v46 = vrot.slane %v1690_v36, %v3628_v30  ;;  %v1809_v47 = vcombine.low %v1681_v35, %v1688_v19  ;;  %v2824_v48 = vcombine.high %v1681_v35, %v1688_v19 }
 0x1ed   : > { %v1774_v1 = vrot.slane %v2822_v63, %v3623_v23  ;;  %v2823_v2 = vcombine.high %v1631_v54, %v1638_v55  ;;  %v2821_v3 = vcombine.high %v1565_v51, %v1572_v56  ;;  %v1782_v9 = vrot.slane %v1775_v59, %v3623_v23  ;;  %v2477_v59 = vld [vmem:[#allocation13 + $0xe8] sm:$0xff] }
 0x1ee   : > { %v1816_v58 = vrot.slane %v1809_v47, %v3623_v23  ;;  %v1824_v52 = vrot.slane %v2824_v48, %v3623_v23  ;;  %v1825_v53 = vcombine.low %v1697_v45, %v1704_v46  ;;  %v2825_v18 = vcombine.high %v1697_v45, %v1704_v46 }
 0x1ef   : > { %v1790_v10 = vrot.slane %v2823_v2, %v3623_v23  ;;  %v1791_v11 = vcombine.low %v1766_v0, %v1774_v1  ;;  %v1732_v13 = vrot.slane %v1725_v60, %v3623_v23  ;;  %v1740_v14 = vrot.slane %v2821_v3, %v3623_v23  ;;  %v2476_v60 = vld [vmem:[#allocation13 + $0xe0] sm:$0xff]  ;;  %v2475_v0 = vld [vmem:[#allocation13 + $0xd8] sm:$0xff]  ;;  %v2474_v1 = vld [vmem:[#allocation13 + $0xd0] sm:$0xff] }
 0x1f0   : > { %v1832_v4 = vrot.slane %v1825_v53, %v3623_v23  ;;  %v1840_v5 = vrot.slane %v2825_v18, %v3623_v23  ;;  %v1841_v6 = vcombine.low %v1816_v58, %v1824_v52  ;;  %v1741_v15 = vcombine.low %v1716_v61, %v1724_v62  ;;  %v2479_v61 = vld [vmem:[#allocation13 + $0xf8] sm:$0xff]  ;;  %v2478_v62 = vld [vmem:[#allocation13 + $0xf0] sm:$0xff]  ;;  %v2473_v2 = vld [vmem:[#allocation13 + $0xc8] sm:$0xff] }
 0x1f1   : > { %v1798_v16 = vrot.slane %v1791_v11, %v3628_v30  ;;  %v1799_v17 = vcombine.low %v1782_v9, %v1790_v10  ;;  %v1749_v27 = vcombine.low %v1732_v13, %v1740_v14  ;;  %v2472_v3 = vld [vmem:[#allocation13 + $0xc0] sm:$0xff]  ;;  %v2466_v9 = vld [vmem:[#allocation13 + $0x90] sm:$0xff]  ;;  %v2465_v10 = vld [vmem:[#allocation13 + $0x88] sm:$0xff] }
 0x1f2   : > { %v1848_v7 = vrot.slane %v1841_v6, %v3628_v30  ;;  %v1849_v8 = vcombine.low %v1832_v4, %v1840_v5  ;;  %v1748_v22 = vrot.slane %v1741_v15, %v3628_v30  ;;  %v2471_v4 = vld [vmem:[#allocation13 + $0xb8] sm:$0xff]  ;;  %v2470_v5 = vld [vmem:[#allocation13 + $0xb0] sm:$0xff]  ;;  %v2469_v6 = vld [vmem:[#allocation13 + $0xa8] sm:$0xff] }
 0x1f3   : > { %v1806_v28 = vrot.slane %v1799_v17, %v3628_v30  ;;  %v1756_v29 = vrot.slane %v1749_v27, %v3628_v30  ;;  %v2464_v11 = vld [vmem:[#allocation13 + $0x80] sm:$0xff]  ;;  %v2462_v13 = vld [vmem:[#allocation13 + $0x70] sm:$0xff]  ;;  %v2461_v14 = vld [vmem:[#allocation13 + $0x68] sm:$0xff] }
 0x1f4   : > { %v1856_v12 = vrot.slane %v1849_v8, %v3628_v30  ;;  %v2467_v8 = vld [vmem:[#allocation13 + $0x98] sm:$0xff]  ;;  %v2460_v15 = vld [vmem:[#allocation13 + $0x60] sm:$0xff]  ;;  %v2458_v17 = vld [vmem:[#allocation13 + $0x50] sm:$0xff] }
 0x1f5   : > { %v1807_v31 = vcombine.low %v1798_v16, %v1806_v28  ;;  %v1808_v32 = vcombine.high %v1798_v16, %v1806_v28  ;;  %v1757_v33 = vcombine.low %v1748_v22, %v1756_v29  ;;  %v1758_v34 = vcombine.high %v1748_v22, %v1756_v29  ;;  %v2459_v16 = vld [vmem:[#allocation13 + $0x58] sm:$0xff]  ;;  %v2454_v27 = vld [vmem:[#allocation13 + $0x30] sm:$0xff]  ;;  %v2453_v28 = vld [vmem:[#allocation13 + $0x28] sm:$0xff] }
 0x1f6   : > { %v1857_v24 = vcombine.low %v1848_v7, %v1856_v12  ;;  %v1858_v25 = vcombine.high %v1848_v7, %v1856_v12  ;;  %v2468_v7 = vld [vmem:[#allocation13 + $0xa0] sm:$0xff]  ;;  %v2463_v12 = vld [vmem:[#allocation13 + $0x78] sm:$0xff] }
 0x1f7   : > { %v2455_v22 = vld [vmem:[#allocation13 + $0x38] sm:$0xff]  ;;  %v2452_v29 = vld [vmem:[#allocation13 + $0x20] sm:$0xff] }
 0x1f8   : > { %2879 = vmatprep.subr.mxu0 %v1857_v24  ;;  %2888 = vmatprep.subr.mxu1 %v1858_v25 }
 0x1f9   : > { %2880 = vmatpush3.msra.mxu0 %v1857_v24  ;;  %2889 = vmatpush3.msra.mxu1 %v1858_v25  ;;  %v2457_v24 = vld [vmem:[#allocation13 + $0x48] sm:$0xff]  ;;  %v2456_v25 = vld [vmem:[#allocation13 + $0x40] sm:$0xff] }
 0x1fa   : > { %2881 = vmatprep.subr.mxu0 %v1807_v31  ;;  %2890 = vmatprep.subr.mxu1 %v1808_v32 }
 0x1fb   : > { %2882 = vmatpush3.msra.mxu0 %v1807_v31  ;;  %2891 = vmatpush3.msra.mxu1 %v1808_v32  ;;  %v2451_v31 = vld [vmem:[#allocation13 + $0x18] sm:$0xff]  ;;  %v2450_v32 = vld [vmem:[#allocation13 + $0x10] sm:$0xff] }
 0x1fc   : > { %2883 = vmatprep.subr.mxu0 %v1757_v33  ;;  %2892 = vmatprep.subr.mxu1 %v1758_v34 }
 0x1fd   : > { %2884 = vmatpush3.msra.mxu0 %v1757_v33  ;;  %2893 = vmatpush3.msra.mxu1 %v1758_v34  ;;  %v2449_v33 = vld [vmem:[#allocation13 + $0x8] sm:$0xff]  ;;  %v2448_v34 = vld [vmem:[#allocation13] sm:$0xff] }
 0x1fe   : > { %2524 = vmatprep.subr.mxu1 %v2479_v61  ;;  %v2483_v61 = vld [vmem:[#allocation13 + $0x118] sm:$0xff] }
 0x283   : > { %v2869_v35 = vpop.f32.mrf.mxu0  ;;  %v2878_v19 = vpop.f32.mrf.mxu1 }
 0x284   : > { %v2013_v21 = vsel %vm2009_vm0, %v2869_v35, -inf  ;;  %v2019_v39 = vsel %vm2009_vm0, %v2878_v19, -inf }
 0x285   : > { %2014 = vmax.xlane.f32.xlu1 %v2013_v21  ;;  %v1925_v36 = vpop.f32.mrf.mxu0  ;;  %v2000_v38 = vpop.f32.mrf.mxu1  ;;  %v2509_v21 = vld [vmem:[#allocation13 + $0x1e8] sm:$0xff] }
 0x286   : > { %v2010_v37 = vsel %vm2009_vm0, %v1925_v36, -inf  ;;  %v2016_v40 = vsel %vm2009_vm0, %v2000_v38, -inf }
 0x287   : > { %2011 = vmax.xlane.f32.xlu0 %v2010_v37  ;;  %v2507_v37 = vld [vmem:[#allocation13 + $0x1d8] sm:$0xff] }
 0x289   : > { %2020 = vmax.xlane.f32.xlu1 %v2019_v39  ;;  %v2505_v39 = vld [vmem:[#allocation13 + $0x1c8] sm:$0xff] }
 0x28b   : > { %2017 = vmax.xlane.f32.xlu0 %v2016_v40  ;;  %v2504_v40 = vld [vmem:[#allocation13 + $0x1c0] sm:$0xff] }
 0x30e   : > { %v2015_v41 = vpop.xlane.xlu1 %2014 }
 0x30f   : > { %v2023_v42 = vsub.f32 %v2869_v35, %v2015_v41  ;;  %v2511_v35 = vld [vmem:[#allocation13 + $0x1f8] sm:$0xff] }
 0x310   : > { %v2012_v43 = vpop.xlane.xlu0 %2011  ;;  %v2503_v41 = vld [vmem:[#allocation13 + $0x1b8] sm:$0xff] }
 0x311   : > { %v2022_v44 = vsub.f32 %v1925_v36, %v2012_v43  ;;  %v2028_v45 = vmul.f32 1.442695, %v2023_v42  ;;  %v2508_v36 = vld [vmem:[#allocation13 + $0x1e0] sm:$0xff]  ;;  %v2502_v42 = vld [vmem:[#allocation13 + $0x1b0] sm:$0xff]  ;;  %v2501_v43 = vld [vmem:[#allocation13 + $0x1a8] sm:$0xff] }
 0x312   : > { %v2021_v46 = vpop.xlane.xlu1 %2020 }
 0x313   : > { %v2026_v47 = vmul.f32 1.442695, %v2022_v44  ;;  %v2025_v48 = vsub.f32 %v2878_v19, %v2021_v46  ;;  %v2510_v19 = vld [vmem:[#allocation13 + $0x1f0] sm:$0xff]  ;;  %v2500_v44 = vld [vmem:[#allocation13 + $0x1a0] sm:$0xff] }
 0x314   : > { %v2018_v49 = vpop.xlane.xlu0 %2017  ;;  %v2498_v46 = vld [vmem:[#allocation13 + $0x190] sm:$0xff] }
 0x315   : > { %3022 = vpow2.f32 %v2026_v47  ;;  %v2024_v50 = vsub.f32 %v2000_v38, %v2018_v49  ;;  %v2032_v54 = vmul.f32 1.442695, %v2025_v48  ;;  %v2506_v38 = vld [vmem:[#allocation13 + $0x1d0] sm:$0xff]  ;;  %v2497_v47 = vld [vmem:[#allocation13 + $0x188] sm:$0xff]  ;;  %v2496_v48 = vld [vmem:[#allocation13 + $0x180] sm:$0xff] }
 0x316   : > { %3024 = vpow2.f32 %v2028_v45  ;;  %v2499_v45 = vld [vmem:[#allocation13 + $0x198] sm:$0xff] }
 0x317   : > { %v2030_v55 = vmul.f32 1.442695, %v2024_v50  ;;  %v2495_v49 = vld [vmem:[#allocation13 + $0x178] sm:$0xff]  ;;  %v2494_v50 = vld [vmem:[#allocation13 + $0x170] sm:$0xff] }
 0x319   : > { %3026 = vpow2.f32 %v2030_v55  ;;  %v2492_v55 = vld [vmem:[#allocation13 + $0x160] sm:$0xff] }
 0x31a   : > { %3028 = vpow2.f32 %v2032_v54  ;;  %v2493_v54 = vld [vmem:[#allocation13 + $0x168] sm:$0xff] }
 0x322   : > { %v3023_v51 = vpop.eup %3022 }
 0x323   : > { %v3025_v56 = vpop.eup %3024  ;;  %2885 = vmatprep.mubr.msk.f32.mxu0 %vm2009_vm0, %v3023_v51  ;;  %v2034_v57 = vsel %vm2009_vm0, %v3023_v51, 0.0  ;;  %v2491_v51 = vld [vmem:[#allocation13 + $0x158] sm:$0xff] }
 0x324   : > { %2035 = vadd.xlane.f32.xlu0 %v2034_v57  ;;  %2886 = vmatmul.mubr.msk.f32.vlgmr.msra.gmra.mxu0 %vm2009_vm0, %v3025_v56  ;;  %v2037_v58 = vsel %vm2009_vm0, %v3025_v56, 0.0  ;;  %v2490_v56 = vld [vmem:[#allocation13 + $0x150] sm:$0xff]  ;;  %v2489_v57 = vld [vmem:[#allocation13 + $0x148] sm:$0xff] }
 0x326   : > { %v3027_v63 = vpop.eup %3026 }
 0x327   : > { %2894 = vmatprep.mubr.msk.f32.mxu1 %vm2009_vm0, %v3027_v63  ;;  %v2040_v52 = vsel %vm2009_vm0, %v3027_v63, 0.0  ;;  %v3029_v53 = vpop.eup %3028  ;;  %v2488_v63 = vld [vmem:[#allocation13 + $0x140] sm:$0xff] }
 0x328   : > { %2038 = vadd.xlane.f32.xlu0 %v2037_v58  ;;  %2041 = vadd.xlane.f32.xlu1 %v2040_v52  ;;  %v2043_v18 = vsel %vm2009_vm0, %v3029_v53, 0.0  ;;  %v2487_v58 = vld [vmem:[#allocation13 + $0x138] sm:$0xff]  ;;  %v2486_v52 = vld [vmem:[#allocation13 + $0x130] sm:$0xff] }
 0x329   : > { %2895 = vmatmul.mubr.msk.f32.vlgmr.msra.gmra.mxu1 %vm2009_vm0, %v3029_v53  ;;  %v2485_v53 = vld [vmem:[#allocation13 + $0x128] sm:$0xff] }
 0x32a   : > { %2525 = vmatpush1.msra.mxu1 %v2478_v62  ;;  %v2482_v62 = vld [vmem:[#allocation13 + $0x110] sm:$0xff] }
 0x32b   : > { %2526 = vmatprep.subr.mxu1 %v2477_v59  ;;  %v2481_v59 = vld [vmem:[#allocation13 + $0x108] sm:$0xff] }
 0x32c   : > { %2044 = vadd.xlane.f32.xlu1 %v2043_v18  ;;  %2527 = vmatpush1.msra.mxu1 %v2476_v60  ;;  %v2484_v18 = vld [vmem:[#allocation13 + $0x120] sm:$0xff] }
 0x32d   : > { %2528 = vmatprep.subr.mxu1 %v2475_v0  ;;  %v2480_v60 = vld [vmem:[#allocation13 + $0x100] sm:$0xff] }
 0x32e   : > { %2529 = vmatpush1.msra.mxu1 %v2474_v1 }
 0x32f   : > { %2530 = vmatprep.subr.mxu1 %v2473_v2 }
 0x330   : > { %2531 = vmatpush1.msra.mxu1 %v2472_v3 }
 0x331   : > { %2532 = vmatprep.subr.mxu1 %v2471_v4 }
 0x332   : > { %2533 = vmatpush1.msra.mxu1 %v2470_v5 }
 0x333   : > { %2534 = vmatprep.subr.mxu1 %v2469_v6 }
 0x334   : > { %2535 = vmatpush1.msra.mxu1 %v2468_v7 }
 0x335   : > { %2536 = vmatprep.subr.mxu1 %v2467_v8 }
 0x336   : > { %2537 = vmatpush1.msra.mxu1 %v2466_v9 }
 0x337   : > { %2538 = vmatprep.subr.mxu1 %v2465_v10 }
 0x338   : > { %2539 = vmatpush1.msra.mxu1 %v2464_v11 }
 0x339   : > { %2540 = vmatprep.subr.mxu1 %v2463_v12 }
 0x33a   : > { %2541 = vmatpush1.msra.mxu1 %v2462_v13 }
 0x33b   : > { %2542 = vmatprep.subr.mxu1 %v2461_v14 }
 0x33c   : > { %2543 = vmatpush1.msra.mxu1 %v2460_v15 }
 0x33d   : > { %2544 = vmatprep.subr.mxu1 %v2459_v16 }
 0x33e   : > { %2545 = vmatpush1.msra.mxu1 %v2458_v17 }
 0x33f   : > { %2546 = vmatprep.subr.mxu1 %v2457_v24 }
 0x340   : > { %2547 = vmatpush1.msra.mxu1 %v2456_v25 }
 0x341   : > { %2548 = vmatprep.subr.mxu1 %v2455_v22 }
 0x342   : > { %2549 = vmatpush1.msra.mxu1 %v2454_v27 }
 0x343   : > { %2550 = vmatprep.subr.mxu1 %v2453_v28 }
 0x344   : > { %2551 = vmatpush1.msra.mxu1 %v2452_v29 }
 0x345   : > { %2552 = vmatprep.subr.mxu1 %v2451_v31 }
 0x346   : > { %2553 = vmatpush1.msra.mxu1 %v2450_v32 }
 0x347   : > { %2554 = vmatprep.subr.mxu1 %v2449_v33 }
 0x348   : > { %2555 = vmatpush1.msra.mxu1 %v2448_v34 }
 0x349   : > { %2556 = vmatprep.subr.mxu1 %v2511_v35 }
 0x34a   : > { %2557 = vmatpush2.msra.mxu1 %v2510_v19 }
 0x34b   : > { %2558 = vmatprep.subr.mxu1 %v2509_v21 }
 0x34c   : > { %2559 = vmatpush2.msra.mxu1 %v2508_v36 }
 0x34d   : > { %2560 = vmatprep.subr.mxu1 %v2507_v37 }
 0x34e   : > { %2561 = vmatpush2.msra.mxu1 %v2506_v38 }
 0x34f   : > { %2562 = vmatprep.subr.mxu1 %v2505_v39 }
 0x350   : > { %2563 = vmatpush2.msra.mxu1 %v2504_v40 }
 0x351   : > { %2564 = vmatprep.subr.mxu1 %v2503_v41 }
 0x352   : > { %2565 = vmatpush2.msra.mxu1 %v2502_v42 }
 0x353   : > { %2566 = vmatprep.subr.mxu1 %v2501_v43 }
 0x354   : > { %2567 = vmatpush2.msra.mxu1 %v2500_v44 }
 0x355   : > { %2568 = vmatprep.subr.mxu1 %v2499_v45 }
 0x356   : > { %2569 = vmatpush2.msra.mxu1 %v2498_v46 }
 0x357   : > { %2570 = vmatprep.subr.mxu1 %v2497_v47 }
 0x358   : > { %2571 = vmatpush2.msra.mxu1 %v2496_v48 }
 0x359   : > { %2572 = vmatprep.subr.mxu1 %v2495_v49 }
 0x35a   : > { %2573 = vmatpush2.msra.mxu1 %v2494_v50 }
 0x35b   : > { %2574 = vmatprep.subr.mxu1 %v2493_v54 }
 0x35c   : > { %2575 = vmatpush2.msra.mxu1 %v2492_v55 }
 0x35d   : > { %2576 = vmatprep.subr.mxu1 %v2491_v51 }
 0x35e   : > { %2577 = vmatpush2.msra.mxu1 %v2490_v56 }
 0x35f   : > { %2578 = vmatprep.subr.mxu1 %v2489_v57 }
 0x360   : > { %2579 = vmatpush2.msra.mxu1 %v2488_v63 }
 0x361   : > { %2580 = vmatprep.subr.mxu1 %v2487_v58 }
 0x362   : > { %2581 = vmatpush2.msra.mxu1 %v2486_v52 }
 0x363   : > { %2582 = vmatprep.subr.mxu1 %v2485_v53 }
 0x364   : > { %2583 = vmatpush2.msra.mxu1 %v2484_v18 }
 0x365   : > { %2584 = vmatprep.subr.mxu1 %v2483_v61 }
 0x366   : > { %2585 = vmatpush2.msra.mxu1 %v2482_v62 }
 0x367   : > { %2586 = vmatprep.subr.mxu1 %v2481_v59 }
 0x368   : > { %2587 = vmatpush2.msra.mxu1 %v2480_v60 }
 0x3ad   : > { %v2036_v0 = vpop.xlane.xlu0 %2035 }
 0x3b1   : > { %v2042_v1 = vpop.xlane.xlu1 %2041  ;;  %v2039_v2 = vpop.xlane.xlu0 %2038 }
 0x3b2   : > { %3030 = vrcp.f32 %v2039_v2 }
 0x3b3   : > { %3032 = vrcp.f32 %v2036_v0 }
 0x3b5   : > { %v2045_v3 = vpop.xlane.xlu1 %2044 }
 0x3b6   : > { %3034 = vrcp.f32 %v2045_v3 }
 0x3b7   : > { %3036 = vrcp.f32 %v2042_v1 }
 0x3bf   : > { %v3031_v4 = vpop.eup %3030 }
 0x3c0   : > { %v3033_v8 = vpop.eup %3032 }
 0x3c3   : > { %v3035_v9 = vpop.eup %3034 }
 0x3c4   : > { %v3037_v14 = vpop.eup %3036 }
 0x3e4   : > { %v2887_v5 = vpop.f32.mrf.mxu0 }
 0x3e5   : > { %v2213_v6 = vmul.f32 %v3031_v4, %v2887_v5 }
 0x3e6   : > { %v2118_v7 = vpop.f32.mrf.mxu0 }
 0x3e7   : > { %v2282_v10 = vcombine.high %v2213_v6, %v3331_v26  ;;  %v2212_v11 = vmul.f32 %v3033_v8, %v2118_v7  ;;  %v2289_v16 = vrot.slane %v2213_v6, %v3623_v23 }
 0x3e9   : > { %v2896_v12 = vpop.f32.mrf.mxu1  ;;  %v2296_v22 = vrot.slane %v2282_v10, %v3623_v23  ;;  %v2216_v27 = vcombine.high %v2212_v11, %v3331_v26  ;;  %v2223_v33 = vrot.slane %v2212_v11, %v3623_v23  ;;  %v2516_v10 = vsub.s32 0, %v3620_v20  ;;  %v2512_v11 = vld [vmem:[%s3894_s7] sm:$0x3] }
 0x3ea   : > { %v2215_v13 = vmul.f32 %v3035_v9, %v2896_v12  ;;  %v2520_v12 = vsub.s32 1, %v3620_v20 }
 0x3eb   : > { %v2199_v15 = vpop.f32.mrf.mxu1  ;;  %v2230_v37 = vrot.slane %v2216_v27, %v3623_v23 }
 0x3ec   : > { %v2297_v17 = vcombine.high %v2215_v13, %v3331_v26  ;;  %v2304_v24 = vrot.slane %v2215_v13, %v3623_v23  ;;  %v2214_v25 = vmul.f32 %v3037_v14, %v2199_v15  ;;  %v2517_v13 = vrot.slane %v2512_v11, %v2516_v10 }
 0x3ed   : > { %v2521_v14 = vrot.slane %v2512_v11, %v2520_v12 }
 0x3ee   : > { %v2311_v28 = vrot.slane %v2297_v17, %v3623_v23  ;;  %v2312_v29 = vcombine.low %v2289_v16, %v2304_v24  ;;  %v2313_v31 = vcombine.high %v2289_v16, %v2304_v24  ;;  %v2231_v32 = vcombine.high %v2214_v25, %v3331_v26 }
 0x3ef   : > { %v2238_v34 = vrot.slane %v2214_v25, %v3623_v23 }
 0x3f0   : > { %v2320_v35 = vrot.slane %v2312_v29, %v3628_v30  ;;  %v2327_v19 = vrot.slane %v2313_v31, %v3628_v30  ;;  %v2328_v21 = vcombine.low %v2296_v22, %v2311_v28  ;;  %v2329_v36 = vcombine.high %v2296_v22, %v2311_v28 }
 0x3f1   : > { %v2245_v38 = vrot.slane %v2231_v32, %v3623_v23  ;;  %v2246_v39 = vcombine.low %v2223_v33, %v2238_v34  ;;  %v2247_v40 = vcombine.high %v2223_v33, %v2238_v34 }
 0x3f2   : > { %v2336_v41 = vrot.slane %v2328_v21, %v3628_v30  ;;  %v2343_v26 = vrot.slane %v2329_v36, %v3628_v30  ;;  %v2398_v42 = vcombine.low %v2320_v35, %v2327_v19  ;;  %v2832_v43 = vcombine.high %v2320_v35, %v2327_v19 }
 0x3f3   : > { %v2254_v44 = vrot.slane %v2246_v39, %v3628_v30  ;;  %v2261_v45 = vrot.slane %v2247_v40, %v3628_v30  ;;  %v2262_v46 = vcombine.low %v2230_v37, %v2245_v38  ;;  %v2263_v47 = vcombine.high %v2230_v37, %v2245_v38 }
 0x3f4   : > { %v2414_v48 = vcombine.low %v2336_v41, %v2343_v26  ;;  %v2833_v49 = vcombine.high %v2336_v41, %v2343_v26  ;;  %v2405_v56 = vrot.slane %v2398_v42, %v3623_v23  ;;  %v2413_v57 = vrot.slane %v2832_v43, %v3623_v23 }
 0x3f5   : > { %v2270_v50 = vrot.slane %v2262_v46, %v3628_v30  ;;  %v2277_v54 = vrot.slane %v2263_v47, %v3628_v30  ;;  %v2348_v55 = vcombine.low %v2254_v44, %v2261_v45  ;;  %v2830_v51 = vcombine.high %v2254_v44, %v2261_v45 }
 0x3f6   : > { %v2421_v63 = vrot.slane %v2414_v48, %v3623_v23  ;;  %v2429_v58 = vrot.slane %v2833_v49, %v3623_v23  ;;  %v2430_v2 = vcombine.low %v2405_v56, %v2413_v57 }
 0x3f7   : > { %v2364_v52 = vcombine.low %v2270_v50, %v2277_v54  ;;  %v2831_v53 = vcombine.high %v2270_v50, %v2277_v54  ;;  %v2355_v18 = vrot.slane %v2348_v55, %v3623_v23  ;;  %v2363_v61 = vrot.slane %v2830_v51, %v3623_v23 }
 0x3f8   : > { %v2438_v0 = vcombine.low %v2421_v63, %v2429_v58  ;;  %v2437_v8 = vrot.slane %v2430_v2, %v3628_v30 }
 0x3f9   : > { %v2371_v62 = vrot.slane %v2364_v52, %v3623_v23  ;;  %v2379_v59 = vrot.slane %v2831_v53, %v3623_v23  ;;  %v2380_v60 = vcombine.low %v2355_v18, %v2363_v61 }
 0x3fa   : > { %v2445_v5 = vrot.slane %v2438_v0, %v3628_v30 }
 0x3fb   : > { %v2388_v1 = vcombine.low %v2371_v62, %v2379_v59  ;;  %v2387_v3 = vrot.slane %v2380_v60, %v3628_v30 }
 0x3fc   : > { %v2447_v9 = vcombine.high %v2437_v8, %v2445_v5  ;;  %v2446_v23 = vcombine.low %v2437_v8, %v2445_v5 }
 0x3fd   : > { %v2395_v4 = vrot.slane %v2388_v1, %v3628_v30 }
 0x3ff   : > { %v2397_v6 = vcombine.high %v2387_v3, %v2395_v4  ;;  %v2396_v7 = vcombine.low %v2387_v3, %v2395_v4 }
 0x401   : > { %2588 = vmatprep.mubr.f32.mxu1 %v2397_v6 }
 0x402   : > { %2589 = vmatmul.mubr.f32.vlgmr.msra.gmra.mxu1 %v2396_v7 }
 0x403   : > { %2594 = vmatprep.mubr.f32.mxu1 %v2447_v9 }
 0x406   : > { %2595 = vmatmul.mubr.f32.gmra.mxu1 %v2446_v23 }
 0x4c2   : > { %v2590_v15 = vpop.f32.mrf.mxu1 }
 0x4c3   : > { %v2591_v16 = vadd.f32 %v2590_v15, %v2517_v13 }
 0x4c4   : > { %v2592_v30 = vpop.f32.mrf.mxu1 }
 0x4c5   : > { %2601 = vst [vmem:[%s477_s14] sm:$0xff] %v2591_v16  ;;  %v2593_v17 = vadd.f32 %v2592_v30, %v2521_v14 }
 0x4c6   : > { %v2596_v24 = vpop.f32.mrf.mxu1 }
 0x4c7   : > { %2602 = vst [vmem:[%s477_s14 + $0x8] sm:$0xff] %v2593_v17  ;;  %v2597_v20 = vadd.f32 %v2596_v24, %v2517_v13 }
 0x4c8   : > { %v2598_v25 = vpop.f32.mrf.mxu1 }
 0x4c9   : > { %2603 = vst [vmem:[%s477_s14 + $0x10] sm:$0xff] %v2597_v20  ;;  %v2599_v22 = vadd.f32 %v2598_v25, %v2521_v14 }
 0x4cb   : > { %2604 = vst [vmem:[%s477_s14 + $0x18] sm:$0xff] %v2599_v22 }
 0x4cc   : > { %3239 = shalt.err (!%p3236_p13)
}
 0x4cd   : > { %s3240_s10 = scalar_lea.hbm %s3839_s4, 512  ;;  %s3244_s27 = scalar_lea.hbm %s3895_s8, 1024 }
 0x4ce   : > { %p3241_p0 = scmp.ne.s32.totalorder %s3839_s4, %s3240_s10  ;;  %p3245_p8 = scmp.lt.s32.totalorder %s3839_s4, %s3895_s8 }
 0x4cf   : > { %p3246_p12 = scmp.lt.s32.totalorder %s3244_s27, %s3240_s10 }
 0x4d0   : > { %p3242_p10 = pnand %p3241_p0, %p3477_p7 }
 0x4d1   : > { %p3247_p5 = por %p3246_p12, %p3245_p8 }
 0x4d2   : > { %p3243_p1 = pneg %p3242_p10 }
 0x4d4   : > { %p3248_p4 = pnand %p3247_p5, %p3243_p1 }
 0x4d6   : > { %3251 = shalt.err (!%p3248_p4)
}
 0x4d7   : > { %s3333_s24 = smov 256   ;;  %s3334_s5 = smov 16  }
 0x4d8   : > { %2924 = dma.vmem_to_hbm [thread:$0]  (%p3477_p7), %s3834_s1, 512, %s3839_s4, %s2606_s29, %s3333_s24, %s3333_s24, %s3334_s5  }
 0x4d9 PF: > { %s3945_s17 = sld [smem:[#allocation20_spill]] }
 0x4da   : > { %s3946_s18 = sld [smem:[#allocation23_spill]] }
 0x4db   : > { %s3947_s11 = sld [smem:[#allocation22_spill]] }
 0x4df   : > { %s2637_s13 = sand.u32 1, %s3945_s17  }
 0x4e0   : > { %p3948_p2 = scmp.ne.s32.totalorder %s3946_s18, 0  ;;  %s2638_s14 = scalar_lea.sflag [#allocation4], %s2637_s13 }
 0x4e1   : > { %p3949_p3 = scmp.ge.s32.totalorder %s3947_s11, 2 }
 0x4e3   : > { %p2950_p6 = pnand %p3949_p3, %p3948_p2 }
 0x4e5   : > { %p2951_p11 = pneg %p2950_p6 }
 0x4e7   : > { %3293 = dma.done.wait (%p2951_p11), %s2638_s14, 512  }
 0x4e8   : > { %3295 = vsyncadd (%p2951_p11), %s2638_s14, 4294966784  ;;  %s29_s10 = sadd.s32 1, %s3947_s11   ;;  %s3950_s22 = sld [smem:[#allocation21_spill]] }
 0x4e9   : > { %p26_p9 = scmp.ge.s32.totalorder %s29_s10, 4   ;;  %s3951_s29 = sld [smem:[#allocation25_spill]] }
 0x4ea   : > { %s3952_s21 = sld [smem:[#allocation24_spill]]  ;;  %s3953_s27 = smov %s3302_s28 }
 0x4eb   : > { %s3955_s30 = smov %s3314_s9 }
 0x4ec   :  { %28 = sbr.rel (!%p26_p9) target bundleno = 16 (0x10), region = 137 }
 0x4ee   : > { %s3954_s28 = smov %s3950_s22 }
 0x4f0   : > { %s3956_s9 = smov %s3952_s21 }
 0x4f1   :  { %2643 = vsyncpa [#allocation3], 1 }
 0x4f2   :  { %2645 = vsyncpa [#allocation3 + $0x1], 1 }
 0x4f3   :  { %2646 = vsyncpa [#allocation6], 1 }
 0x4f4   :  { %2648 = vsyncpa [#allocation6 + $0x1], 1 }
 0x4f5   :  { %2649 = vsyncpa [#allocation9], 1 }
 0x4f6   :  { %2650 = vsyncpa [#allocation12], 1 }
 0x4f7   :  { %2651 = vsyncpa [#allocation4], 1 }
 0x4f8   :  { %2653 = vsyncpa [#allocation4 + $0x1], 1 }

</bundles_post_ra>
